<compile_context>
chip_gen: v7x
topology: tpu7x:2x2x1
jax: 0.10.0
libtpu: 0.0.40
codegen_flags: <defaults>
</compile_context>

<pallas_src>
import functools

import jax
import jax.numpy as jnp
from jax.experimental import pallas as pl
from jax.experimental.pallas import tpu as pltpu

EPS = 1e-5


def _banded_weight(w, H, W):
    """(3,3,3,Cin,Cout) DHWIO -> (3*H*W*Cin, H*W*Cout) banded conv matrix.

    row = kd*(H*W*Cin) + (hi*W + wi)*Cin + ci   (kd segment, input position)
    col = (ho*W + wo)*Cout + co                 (output position)
    val = w[kd, hi-ho+1, wi-wo+1, ci, co] if the tap is in range else 0.
    The zeros bake the pad=1 halo in H and W directly into the matrix; the
    D halo is handled in-kernel with shift matrices.
    """
    kD, kH, kW, Cin, Cout = w.shape
    w = w.astype(jnp.float32)
    # SH[kh][hi, ho] = 1 iff hi == ho + kh - 1  (shift-with-zero-fill matrices)
    SH = jnp.stack([jnp.eye(H, k=1 - kh, dtype=jnp.float32) for kh in range(kH)])
    SW = jnp.stack([jnp.eye(W, k=1 - kw, dtype=jnp.float32) for kw in range(kW)])
    big = jnp.einsum('ahp,bwq,dabio->dhwipqo', SH, SW, w)
    return big.reshape(kD * H * W * Cin, H * W * Cout)


def _resblock_kernel(x_ref, w1_ref, w2_ref, g1_ref, b1_ref, g2_ref, b2_ref,
                     p_ref, o_ref, *, D):
    """Fused conv+IN+ReLU -> conv+IN -> +x for one batch element."""
    x = x_ref[0].astype(jnp.float32)                  # (D, H*W*Cin)

    # D-axis shift matrices (zero-filled) to fold the kd taps into the lane
    # (K) dimension without any unaligned slicing of the activation.
    r = jax.lax.broadcasted_iota(jnp.int32, (D, D), 0)
    c = jax.lax.broadcasted_iota(jnp.int32, (D, D), 1)
    sdn = (c == r - 1).astype(jnp.float32)            # row d <- row d-1
    sup = (c == r + 1).astype(jnp.float32)            # row d <- row d+1

    p_avg = p_ref[...]                                # (Q, Q) channel averager

    def conv_in(inp, w_ref, g_ref, b_ref, relu):
        # Single contraction: (D, 3*K) @ (3*K, Q)  on the MXU.
        aug = jnp.concatenate(
            [jnp.dot(sdn, inp, preferred_element_type=jnp.float32),
             inp,
             jnp.dot(sup, inp, preferred_element_type=jnp.float32)],
            axis=1)
        acc = jnp.dot(aug, w_ref[...], preferred_element_type=jnp.float32)

        # InstanceNorm (per-channel over D*H*W, biased variance) computed in
        # the lane-dense layout: sublane row-sum, then channel-average matmul.
        s = jnp.sum(acc, axis=0, keepdims=True)                       # (1, Q)
        mean = jnp.dot(s, p_avg, preferred_element_type=jnp.float32)  # (1, Q)
        diff = acc - mean
        ss = jnp.sum(diff * diff, axis=0, keepdims=True)
        var = jnp.dot(ss, p_avg, preferred_element_type=jnp.float32)
        y = diff * jax.lax.rsqrt(var + EPS) * g_ref[...] + b_ref[...]
        if relu:
            y = jnp.maximum(y, 0.0)
        return y

    h = conv_in(x, w1_ref, g1_ref, b1_ref, relu=True)
    y = conv_in(h, w2_ref, g2_ref, b2_ref, relu=False)
    o_ref[0] = (x + y).astype(o_ref.dtype)


def residual_block(x_ndhwc, params):
    """Forward pass of ResidualBlock, NDHWC layout."""
    N, D, H, W, Cin = x_ndhwc.shape
    Cout = params["w1"].shape[-1]
    assert Cin == Cout, "residual add requires dim_in == dim_out"
    K1 = H * W * Cin
    Q = H * W * Cout

    # Wrapper-side glue (tiny, one-time): lane-dense views and folded weights.
    x2d = x_ndhwc.reshape(N, D, K1)
    w1b = _banded_weight(params["w1"], H, W)          # (3*K1, Q)
    w2b = _banded_weight(params["w2"], H, W)          # (3*Q,  Q)

    def lane_vec(v):
        return jnp.tile(v.astype(jnp.float32), H * W).reshape(1, Q)

    g1, b1 = lane_vec(params["g1"]), lane_vec(params["b1"])
    g2, b2 = lane_vec(params["g2"]), lane_vec(params["b2"])

    ch = jnp.arange(Q, dtype=jnp.int32) % Cout
    p_avg = (ch[:, None] == ch[None, :]).astype(jnp.float32) / float(D * H * W)

    kernel = functools.partial(_resblock_kernel, D=D)

    out2d = pl.pallas_call(
        kernel,
        out_shape=jax.ShapeDtypeStruct((N, D, Q), x_ndhwc.dtype),
        grid=(N,),
        in_specs=[
            pl.BlockSpec((1, D, K1), lambda n: (n, 0, 0)),
            pl.BlockSpec((3 * K1, Q), lambda n: (0, 0)),
            pl.BlockSpec((3 * Q, Q), lambda n: (0, 0)),
            pl.BlockSpec((1, Q), lambda n: (0, 0)),
            pl.BlockSpec((1, Q), lambda n: (0, 0)),
            pl.BlockSpec((1, Q), lambda n: (0, 0)),
            pl.BlockSpec((1, Q), lambda n: (0, 0)),
            pl.BlockSpec((Q, Q), lambda n: (0, 0)),
        ],
        out_specs=pl.BlockSpec((1, D, Q), lambda n: (n, 0, 0)),
        compiler_params=pltpu.CompilerParams(
            dimension_semantics=("parallel",),
            vmem_limit_bytes=32 * 1024 * 1024,
        ),
    )(x2d, w1b, w2b, g1, b1, g2, b2, p_avg)

    return out2d.reshape(N, D, H, W, Cout)


def make_params(key, dim_in, dim_out):
    k1, k2 = jax.random.split(key)
    # Deterministic synthetic init (PyTorch Conv3d is kaiming-uniform; we just
    # need deterministic, reasonably-scaled weights).
    w1 = 0.1 * jax.random.normal(k1, (3, 3, 3, dim_in, dim_out), jnp.float32)
    w2 = 0.1 * jax.random.normal(k2, (3, 3, 3, dim_out, dim_out), jnp.float32)
    # InstanceNorm affine params at PyTorch default init (weight=1, bias=0).
    g1 = jnp.ones((dim_out,), jnp.float32)
    b1 = jnp.zeros((dim_out,), jnp.float32)
    g2 = jnp.ones((dim_out,), jnp.float32)
    b2 = jnp.zeros((dim_out,), jnp.float32)
    return {"w1": w1, "g1": g1, "b1": b1, "w2": w2, "g2": g2, "b2": b2}


def _reference_block(x_ndhwc, params):
    """Pure-JAX reference for correctness checking."""
    def conv(x, w):
        return jax.lax.conv_general_dilated(
            x, w, window_strides=(1, 1, 1),
            padding=((1, 1), (1, 1), (1, 1)),
            dimension_numbers=("NDHWC", "DHWIO", "NDHWC"))

    def inorm(y, g, b):
        mean = jnp.mean(y, axis=(1, 2, 3), keepdims=True)
        var = jnp.mean((y - mean) ** 2, axis=(1, 2, 3), keepdims=True)
        return (y - mean) * jax.lax.rsqrt(var + EPS) * g + b

    h = jax.nn.relu(inorm(conv(x_ndhwc, params["w1"]),
                          params["g1"], params["b1"]))
    return x_ndhwc + inorm(conv(h, params["w2"]), params["g2"], params["b2"])


if __name__ == "__main__":
    key = jax.random.PRNGKey(0)
    kx, kp = jax.random.split(key)

    # Small shapes: batch=2, channels=4 (dim_in == dim_out for the residual),
    # spatial D=H=W=8.  Input built in PyTorch's NCDHW convention, then
    # permuted to the kernel's NDHWC layout.
    N, C, D, H, W = 2, 4, 8, 8, 8
    x_ncdhw = jax.random.normal(kx, (N, C, D, H, W), jnp.float32)
    x_ndhwc = jnp.transpose(x_ncdhw, (0, 2, 3, 4, 1))

    params = make_params(kp, dim_in=C, dim_out=C)

    out = residual_block(x_ndhwc, params)
    out = jax.block_until_ready(out)

    ref = _reference_block(x_ndhwc, params)
    assert out.shape == (N, D, H, W, C)
    assert jnp.allclose(out, ref, atol=1e-4, rtol=1e-4), \
        f"max abs err {jnp.max(jnp.abs(out - ref))}"

    print("KERNEL_OK")
</pallas_src>

<mosaic_0001>
module attributes {stable_mosaic.version = 11 : i64} {
  func.func @_resblock_kernel(%arg0: i32, %arg1: memref<1x8x256xf32, #tpu.memory_space<vmem>>, %arg2: memref<768x256xf32, #tpu.memory_space<vmem>>, %arg3: memref<768x256xf32, #tpu.memory_space<vmem>>, %arg4: memref<1x256xf32, #tpu.memory_space<vmem>>, %arg5: memref<1x256xf32, #tpu.memory_space<vmem>>, %arg6: memref<1x256xf32, #tpu.memory_space<vmem>>, %arg7: memref<1x256xf32, #tpu.memory_space<vmem>>, %arg8: memref<256x256xf32, #tpu.memory_space<vmem>>, %arg9: memref<1x8x256xf32, #tpu.memory_space<vmem>>) attributes {dimension_semantics = [#tpu.dimension_semantics<parallel>], iteration_bounds = array<i64: 2>, scalar_prefetch = 0 : i64, scratch_operands = 0 : i64, tpu.core_type = #tpu.core_type<tc>, window_params = [{transform_indices = @transform_0, window_bounds = array<i64: 1, 8, 256>}, {pipeline_mode = #tpu.pipeline_mode<synchronous>, transform_indices = @transform_1, window_bounds = array<i64: 768, 256>}, {pipeline_mode = #tpu.pipeline_mode<synchronous>, transform_indices = @transform_2, window_bounds = array<i64: 768, 256>}, {pipeline_mode = #tpu.pipeline_mode<synchronous>, transform_indices = @transform_3, window_bounds = array<i64: 1, 256>}, {pipeline_mode = #tpu.pipeline_mode<synchronous>, transform_indices = @transform_4, window_bounds = array<i64: 1, 256>}, {pipeline_mode = #tpu.pipeline_mode<synchronous>, transform_indices = @transform_5, window_bounds = array<i64: 1, 256>}, {pipeline_mode = #tpu.pipeline_mode<synchronous>, transform_indices = @transform_6, window_bounds = array<i64: 1, 256>}, {pipeline_mode = #tpu.pipeline_mode<synchronous>, transform_indices = @transform_7, window_bounds = array<i64: 256, 256>}, {transform_indices = @transform_8, window_bounds = array<i64: 1, 8, 256>}]} {
    %c0 = arith.constant 0 : index
    %c0_0 = arith.constant 0 : index
    %c0_1 = arith.constant 0 : index
    %0 = vector.load %arg1[%c0, %c0_0, %c0_1] : memref<1x8x256xf32, #tpu.memory_space<vmem>>, vector<1x8x256xf32>
    %1 = vector.shape_cast %0 : vector<1x8x256xf32> to vector<8x256xf32>
    %2 = tpu.iota {dimensions = array<i32: 0>} : vector<8x8xi32>
    %3 = tpu.iota {dimensions = array<i32: 1>} : vector<8x8xi32>
    %c1_i32 = arith.constant 1 : i32
    %4 = vector.broadcast %c1_i32 : i32 to vector<8x8xi32>
    %5 = arith.subi %2, %4 : vector<8x8xi32>
    %6 = arith.cmpi eq, %3, %5 : vector<8x8xi32>
    %7 = arith.extui %6 : vector<8x8xi1> to vector<8x8xi32>
    %8 = arith.sitofp %7 : vector<8x8xi32> to vector<8x8xf32>
    %c1_i32_2 = arith.constant 1 : i32
    %9 = vector.broadcast %c1_i32_2 : i32 to vector<8x8xi32>
    %10 = arith.addi %2, %9 : vector<8x8xi32>
    %11 = arith.cmpi eq, %3, %10 : vector<8x8xi32>
    %12 = arith.extui %11 : vector<8x8xi1> to vector<8x8xi32>
    %13 = arith.sitofp %12 : vector<8x8xi32> to vector<8x8xf32>
    %c0_3 = arith.constant 0 : index
    %c0_4 = arith.constant 0 : index
    %14 = vector.load %arg8[%c0_3, %c0_4] : memref<256x256xf32, #tpu.memory_space<vmem>>, vector<256x256xf32>
    %cst = arith.constant dense<0.000000e+00> : vector<8x256xf32>
    %15 = tpu.matmul %8, %1, %cst {dimension_numbers = #tpu.dot_dimension_numbers<[1], [0], [0], [1], [0, 0, 1, 1], [], []>} : vector<8x8xf32>, vector<8x256xf32>, vector<8x256xf32> -> vector<8x256xf32>
    %cst_5 = arith.constant dense<0.000000e+00> : vector<8x256xf32>
    %16 = tpu.matmul %13, %1, %cst_5 {dimension_numbers = #tpu.dot_dimension_numbers<[1], [0], [0], [1], [0, 0, 1, 1], [], []>} : vector<8x8xf32>, vector<8x256xf32>, vector<8x256xf32> -> vector<8x256xf32>
    %17 = tpu.concatenate %15, %1, %16 in 1 : vector<8x256xf32>, vector<8x256xf32>, vector<8x256xf32> -> vector<8x768xf32>
    %c0_6 = arith.constant 0 : index
    %c0_7 = arith.constant 0 : index
    %18 = vector.load %arg2[%c0_6, %c0_7] : memref<768x256xf32, #tpu.memory_space<vmem>>, vector<768x256xf32>
    %cst_8 = arith.constant dense<0.000000e+00> : vector<8x256xf32>
    %19 = tpu.matmul %17, %18, %cst_8 {dimension_numbers = #tpu.dot_dimension_numbers<[1], [0], [0], [1], [0, 0, 1, 1], [], []>} : vector<8x768xf32>, vector<768x256xf32>, vector<8x256xf32> -> vector<8x256xf32>
    %cst_9 = arith.constant dense<0.000000e+00> : vector<256xf32>
    %20 = vector.multi_reduction <add>, %19, %cst_9 [0] : vector<8x256xf32> to vector<256xf32>
    %21 = vector.shape_cast %20 : vector<256xf32> to vector<1x256xf32>
    %cst_10 = arith.constant dense<0.000000e+00> : vector<1x256xf32>
    %22 = tpu.matmul %21, %14, %cst_10 {dimension_numbers = #tpu.dot_dimension_numbers<[1], [0], [0], [1], [0, 0, 1, 1], [], []>} : vector<1x256xf32>, vector<256x256xf32>, vector<1x256xf32> -> vector<1x256xf32>
    %23 = vector.broadcast %22 : vector<1x256xf32> to vector<8x256xf32>
    %24 = arith.subf %19, %23 : vector<8x256xf32>
    %25 = arith.mulf %24, %24 : vector<8x256xf32>
    %cst_11 = arith.constant dense<0.000000e+00> : vector<256xf32>
    %26 = vector.multi_reduction <add>, %25, %cst_11 [0] : vector<8x256xf32> to vector<256xf32>
    %27 = vector.shape_cast %26 : vector<256xf32> to vector<1x256xf32>
    %cst_12 = arith.constant dense<0.000000e+00> : vector<1x256xf32>
    %28 = tpu.matmul %27, %14, %cst_12 {dimension_numbers = #tpu.dot_dimension_numbers<[1], [0], [0], [1], [0, 0, 1, 1], [], []>} : vector<1x256xf32>, vector<256x256xf32>, vector<1x256xf32> -> vector<1x256xf32>
    %cst_13 = arith.constant 9.99999974E-6 : f32
    %29 = vector.broadcast %cst_13 : f32 to vector<1x256xf32>
    %30 = arith.addf %28, %29 : vector<1x256xf32>
    %31 = math.rsqrt %30 : vector<1x256xf32>
    %32 = vector.broadcast %31 : vector<1x256xf32> to vector<8x256xf32>
    %33 = arith.mulf %24, %32 : vector<8x256xf32>
    %c0_14 = arith.constant 0 : index
    %c0_15 = arith.constant 0 : index
    %34 = vector.load %arg4[%c0_14, %c0_15] : memref<1x256xf32, #tpu.memory_space<vmem>>, vector<1x256xf32>
    %35 = vector.broadcast %34 : vector<1x256xf32> to vector<8x256xf32>
    %36 = arith.mulf %33, %35 : vector<8x256xf32>
    %c0_16 = arith.constant 0 : index
    %c0_17 = arith.constant 0 : index
    %37 = vector.load %arg5[%c0_16, %c0_17] : memref<1x256xf32, #tpu.memory_space<vmem>>, vector<1x256xf32>
    %38 = vector.broadcast %37 : vector<1x256xf32> to vector<8x256xf32>
    %39 = arith.addf %36, %38 : vector<8x256xf32>
    %cst_18 = arith.constant 0.000000e+00 : f32
    %40 = vector.broadcast %cst_18 : f32 to vector<8x256xf32>
    %41 = arith.maximumf %39, %40 : vector<8x256xf32>
    %cst_19 = arith.constant dense<0.000000e+00> : vector<8x256xf32>
    %42 = tpu.matmul %8, %41, %cst_19 {dimension_numbers = #tpu.dot_dimension_numbers<[1], [0], [0], [1], [0, 0, 1, 1], [], []>} : vector<8x8xf32>, vector<8x256xf32>, vector<8x256xf32> -> vector<8x256xf32>
    %cst_20 = arith.constant dense<0.000000e+00> : vector<8x256xf32>
    %43 = tpu.matmul %13, %41, %cst_20 {dimension_numbers = #tpu.dot_dimension_numbers<[1], [0], [0], [1], [0, 0, 1, 1], [], []>} : vector<8x8xf32>, vector<8x256xf32>, vector<8x256xf32> -> vector<8x256xf32>
    %44 = tpu.concatenate %42, %41, %43 in 1 : vector<8x256xf32>, vector<8x256xf32>, vector<8x256xf32> -> vector<8x768xf32>
    %c0_21 = arith.constant 0 : index
    %c0_22 = arith.constant 0 : index
    %45 = vector.load %arg3[%c0_21, %c0_22] : memref<768x256xf32, #tpu.memory_space<vmem>>, vector<768x256xf32>
    %cst_23 = arith.constant dense<0.000000e+00> : vector<8x256xf32>
    %46 = tpu.matmul %44, %45, %cst_23 {dimension_numbers = #tpu.dot_dimension_numbers<[1], [0], [0], [1], [0, 0, 1, 1], [], []>} : vector<8x768xf32>, vector<768x256xf32>, vector<8x256xf32> -> vector<8x256xf32>
    %cst_24 = arith.constant dense<0.000000e+00> : vector<256xf32>
    %47 = vector.multi_reduction <add>, %46, %cst_24 [0] : vector<8x256xf32> to vector<256xf32>
    %48 = vector.shape_cast %47 : vector<256xf32> to vector<1x256xf32>
    %cst_25 = arith.constant dense<0.000000e+00> : vector<1x256xf32>
    %49 = tpu.matmul %48, %14, %cst_25 {dimension_numbers = #tpu.dot_dimension_numbers<[1], [0], [0], [1], [0, 0, 1, 1], [], []>} : vector<1x256xf32>, vector<256x256xf32>, vector<1x256xf32> -> vector<1x256xf32>
    %50 = vector.broadcast %49 : vector<1x256xf32> to vector<8x256xf32>
    %51 = arith.subf %46, %50 : vector<8x256xf32>
    %52 = arith.mulf %51, %51 : vector<8x256xf32>
    %cst_26 = arith.constant dense<0.000000e+00> : vector<256xf32>
    %53 = vector.multi_reduction <add>, %52, %cst_26 [0] : vector<8x256xf32> to vector<256xf32>
    %54 = vector.shape_cast %53 : vector<256xf32> to vector<1x256xf32>
    %cst_27 = arith.constant dense<0.000000e+00> : vector<1x256xf32>
    %55 = tpu.matmul %54, %14, %cst_27 {dimension_numbers = #tpu.dot_dimension_numbers<[1], [0], [0], [1], [0, 0, 1, 1], [], []>} : vector<1x256xf32>, vector<256x256xf32>, vector<1x256xf32> -> vector<1x256xf32>
    %cst_28 = arith.constant 9.99999974E-6 : f32
    %56 = vector.broadcast %cst_28 : f32 to vector<1x256xf32>
    %57 = arith.addf %55, %56 : vector<1x256xf32>
    %58 = math.rsqrt %57 : vector<1x256xf32>
    %59 = vector.broadcast %58 : vector<1x256xf32> to vector<8x256xf32>
    %60 = arith.mulf %51, %59 : vector<8x256xf32>
    %c0_29 = arith.constant 0 : index
    %c0_30 = arith.constant 0 : index
    %61 = vector.load %arg6[%c0_29, %c0_30] : memref<1x256xf32, #tpu.memory_space<vmem>>, vector<1x256xf32>
    %62 = vector.broadcast %61 : vector<1x256xf32> to vector<8x256xf32>
    %63 = arith.mulf %60, %62 : vector<8x256xf32>
    %c0_31 = arith.constant 0 : index
    %c0_32 = arith.constant 0 : index
    %64 = vector.load %arg7[%c0_31, %c0_32] : memref<1x256xf32, #tpu.memory_space<vmem>>, vector<1x256xf32>
    %65 = vector.broadcast %64 : vector<1x256xf32> to vector<8x256xf32>
    %66 = arith.addf %63, %65 : vector<8x256xf32>
    %67 = arith.addf %1, %66 : vector<8x256xf32>
    %c0_33 = arith.constant 0 : index
    %c0_34 = arith.constant 0 : index
    %c0_35 = arith.constant 0 : index
    %68 = vector.load %arg9[%c0_33, %c0_34, %c0_35] : memref<1x8x256xf32, #tpu.memory_space<vmem>>, vector<1x8x256xf32>
    %69 = vector.shape_cast %68 : vector<1x8x256xf32> to vector<8x256xf32>
    %70 = vector.shape_cast %67 : vector<8x256xf32> to vector<1x8x256xf32>
    tpu.vector_store %arg9[%c0_33, %c0_34, %c0_35], %70 {strides = array<i32>} : memref<1x8x256xf32, #tpu.memory_space<vmem>>, vector<1x8x256xf32>,
    return
  }
  func.func @transform_0(%arg0: i32) -> (i32, i32, i32) {
    %c0_i32 = arith.constant 0 : i32
    %c0_i32_0 = arith.constant 0 : i32
    %c0_i32_1 = arith.constant 0 : i32
    return %arg0, %c0_i32, %c0_i32_0 : i32, i32, i32
  }
  func.func @transform_1(%arg0: i32) -> (i32, i32) {
    %c0_i32 = arith.constant 0 : i32
    %c0_i32_0 = arith.constant 0 : i32
    %c0_i32_1 = arith.constant 0 : i32
    return %c0_i32, %c0_i32_0 : i32, i32
  }
  func.func @transform_2(%arg0: i32) -> (i32, i32) {
    %c0_i32 = arith.constant 0 : i32
    %c0_i32_0 = arith.constant 0 : i32
    %c0_i32_1 = arith.constant 0 : i32
    return %c0_i32, %c0_i32_0 : i32, i32
  }
  func.func @transform_3(%arg0: i32) -> (i32, i32) {
    %c0_i32 = arith.constant 0 : i32
    %c0_i32_0 = arith.constant 0 : i32
    %c0_i32_1 = arith.constant 0 : i32
    return %c0_i32, %c0_i32_0 : i32, i32
  }
  func.func @transform_4(%arg0: i32) -> (i32, i32) {
    %c0_i32 = arith.constant 0 : i32
    %c0_i32_0 = arith.constant 0 : i32
    %c0_i32_1 = arith.constant 0 : i32
    return %c0_i32, %c0_i32_0 : i32, i32
  }
  func.func @transform_5(%arg0: i32) -> (i32, i32) {
    %c0_i32 = arith.constant 0 : i32
    %c0_i32_0 = arith.constant 0 : i32
    %c0_i32_1 = arith.constant 0 : i32
    return %c0_i32, %c0_i32_0 : i32, i32
  }
  func.func @transform_6(%arg0: i32) -> (i32, i32) {
    %c0_i32 = arith.constant 0 : i32
    %c0_i32_0 = arith.constant 0 : i32
    %c0_i32_1 = arith.constant 0 : i32
    return %c0_i32, %c0_i32_0 : i32, i32
  }
  func.func @transform_7(%arg0: i32) -> (i32, i32) {
    %c0_i32 = arith.constant 0 : i32
    %c0_i32_0 = arith.constant 0 : i32
    %c0_i32_1 = arith.constant 0 : i32
    return %c0_i32, %c0_i32_0 : i32, i32
  }
  func.func @transform_8(%arg0: i32) -> (i32, i32, i32) {
    %c0_i32 = arith.constant 0 : i32
    %c0_i32_0 = arith.constant 0 : i32
    %c0_i32_1 = arith.constant 0 : i32
    return %arg0, %c0_i32, %c0_i32_0 : i32, i32, i32
  }
}

</mosaic_0001>

<bundles_post_ra>
// kernel: tpu_custom_call.1
= control target key start
LH: loop header
LB: loop body
LE: loop exit
PB: predicated region body
PF: predicated region fallthrough
CT: control target
= control target key end

     0   :  { %13 = vsyncpa [#allocation3], 0  ;;  %s3664_s0 = inlined_call_operand.hbm [shape: f32[2,8,256], index: 0, kind: input, shape index: {}]   ;;  %s3665_s1 = inlined_call_operand.hbm [shape: f32[768,256], index: 1, kind: input, shape index: {}]   ;;  %s3666_s2 = inlined_call_operand.hbm [shape: f32[768,256], index: 2, kind: input, shape index: {}]   ;;  %s3667_s3 = inlined_call_operand.vmem [shape: f32[1,256], index: 3, kind: input, shape index: {}]   ;;  %s3668_s4 = inlined_call_operand.vmem [shape: f32[1,256], index: 4, kind: input, shape index: {}]   ;;  %s3669_s5 = inlined_call_operand.vmem [shape: f32[1,256], index: 5, kind: input, shape index: {}]   ;;  %s3670_s6 = inlined_call_operand.vmem [shape: f32[1,256], index: 6, kind: input, shape index: {}]   ;;  %s3671_s7 = inlined_call_operand.hbm [shape: f32[256,256], index: 7, kind: input, shape index: {}]   ;;  %s3672_s8 = inlined_call_operand.hbm [shape: f32[2,8,256], index: 8, kind: output, shape index: {}]  }
   0x1   :  { %15 = vsyncpa [#allocation3 + $0x1], 0 }
   0x2   :  { %16 = vsyncpa [#allocation6], 0 }
   0x3   :  { %17 = vsyncpa [#allocation9], 0 }
   0x4   :  { %18 = vsyncpa [#allocation4], 0 }
   0x5   :  { %20 = vsyncpa [#allocation4 + $0x1], 0  ;;  %s3111_s27 = smov 0   ;;  %s3113_s28 = smov 0  }
   0x6   :  { %s3115_s29 = smov 0   ;;  %s3117_s30 = smov 0  }
   0x7 LB: > { %3678 = sst [smem:[#allocation15_spill]] %s3044_s27  ;;  %s3132_s9 = sadd.s32 4294967295, %s3056_s30   ;;  %s3056_s30 = sphi %s3117_s30, %s3701_s30   ;;  %s3052_s29 = sphi %s3115_s29, %s3700_s29   ;;  %s3048_s28 = sphi %s3113_s28, %s3699_s28   ;;  %s3044_s27 = sphi %s3111_s27, %s3698_s27  }
   0x8   : > { %s2101_s10 = sadd.s32 4294967294, %s3056_s30   ;;  %p46_p0 = scmp.ne.s32.totalorder %s3048_s28, %s3044_s27 }
   0x9   : > { %p3673_p1 = scmp.eq.s32.totalorder %s3132_s9, 0  ;;  %p223_p3 = scmp.eq.s32.totalorder %s2101_s10, 1 }
   0xa   : > { %p2102_p5 = scmp.ge.s32.totalorder %s3056_s30, 1  ;;  %p230_p7 = scmp.lt.s32.totalorder %s3056_s30, 3 }
   0xb   : > { %p3141_p4 = por %p3673_p1, %p46_p0  ;;  %p3146_p6 = por %p223_p3, %p46_p0 }
   0xc   : > { %p3151_p8 = pnand %p2102_p5, %p230_p7  ;;  %s3058_s14 = smov [#allocation5]  }
   0xd   : > { %s3679_s11 = scalar_select %p3141_p4, 1, 0 }
   0xe   : > { %s3680_s12 = scalar_select %p3146_p6, 1, 0 }
   0xf   : > { %s3682_s13 = scalar_select %p3151_p8, 1, 0 }
  0x10   : > { %3681 = sst [smem:[#allocation16_spill]] %s3680_s12  ;;  %s242_s15 = sshll.u32 %s3058_s14, 4  ;;  %s3155_s15 = int_to_ptr.vmem [resolvable:$true] %s242_s15 }
  0x11   : > { %p2794_p9 = pneg %p3151_p8  ;;  %s3059_s17 = smov [#allocation7]  }
  0x12   : > { %s255_s18 = sshll.u32 %s3059_s17, 4  ;;  %s3060_s19 = smov [#allocation8]   ;;  %s3166_s18 = int_to_ptr.vmem [resolvable:$true] %s255_s18 }
  0x13   : > { %p3162_p11 = pnand %p2794_p9, %p3673_p1  ;;  %s3168_s20 = sshll.u32 %s3060_s19, 4  ;;  %s281_s20 = int_to_ptr.vmem [resolvable:$true] %s3168_s20 }
  0x14   : > { %s2868_s23 = scalar_lea.hbm %s3665_s1, 24576 }
  0x15   : > { %p2869_p12 = scmp.ne.s32.totalorder %s3665_s1, %s2868_s23  ;;  %p3178_p13 = pneg %p3162_p11 }
  0x16   : > { %p2875_p5 = scmp.lt.u32.totalorder %s2868_s23, %s3665_s1 }
  0x17   : > { %p2871_p0 = pnand %p3178_p13, %p2869_p12 }
  0x19   : > { %p2872_p3 = pneg %p2871_p0 }
  0x1b   : > { %p2877_p7 = pnand %p2875_p5, %p2872_p3 }
  0x1d   : > { %2880 = shalt.err (!%p2877_p7)
}
  0x1e   : > { %s2881_s17 = scalar_lea.vmem %s3155_s15, 24576  ;;  %p2889_p2 = scmp.lt.s32.totalorder %s3155_s15, %s3155_s15 }
  0x1f   : > { %p2882_p9 = scmp.ne.s32.totalorder %s3155_s15, %s2881_s17  ;;  %p2890_p6 = scmp.lt.s32.totalorder %s2881_s17, %s2881_s17 }
  0x21   : > { %p2884_p10 = pnand %p2882_p9, %p3178_p13  ;;  %p2891_p12 = por %p2890_p6, %p2889_p2 }
  0x23   : > { %p2885_p1 = pneg %p2884_p10 }
  0x25   : > { %p2892_p0 = pnand %p2891_p12, %p2885_p1 }
  0x27   : > { %2895 = shalt.err (!%p2892_p0)
}
  0x28   : > { %s3061_s19 = smov 256   ;;  %s3062_s21 = smov 16  }
  0x29   : > { %2797 = dma.hbm_to_vmem [thread:$0]  (!%p3162_p11), %s3665_s1, 24576, %s3155_s15, [#allocation6], %s3061_s19, %s3061_s19, %s3062_s21  }
  0x2a   : > { %s2896_s10 = scalar_lea.hbm %s3666_s2, 24576 }
  0x2b   : > { %p2897_p1 = scmp.ne.s32.totalorder %s3666_s2, %s2896_s10  ;;  %p2903_p10 = scmp.lt.u32.totalorder %s2896_s10, %s3666_s2 }
  0x2d   : > { %p2899_p2 = pnand %p2897_p1, %p3178_p13 }
  0x2f   : > { %p2900_p6 = pneg %p2899_p2 }
  0x31   : > { %p2905_p3 = pnand %p2903_p10, %p2900_p6 }
  0x33   : > { %2908 = shalt.err (!%p2905_p3)
}
  0x34   : > { %s2909_s15 = scalar_lea.vmem %s3166_s18, 24576  ;;  %p2917_p12 = scmp.lt.s32.totalorder %s3166_s18, %s3166_s18 }
  0x35   : > { %p2910_p5 = scmp.ne.s32.totalorder %s3166_s18, %s2909_s15  ;;  %p2918_p0 = scmp.lt.s32.totalorder %s2909_s15, %s2909_s15 }
  0x37   : > { %p2912_p7 = pnand %p2910_p5, %p3178_p13  ;;  %p2919_p1 = por %p2918_p0, %p2917_p12 }
  0x39   : > { %p2913_p9 = pneg %p2912_p7 }
  0x3b   : > { %p2920_p2 = pnand %p2919_p1, %p2913_p9 }
  0x3d   : > { %2923 = shalt.err (!%p2920_p2)
}
  0x3e   : > { %2800 = dma.hbm_to_vmem [thread:$0]  (!%p3162_p11), %s3666_s2, 24576, %s3166_s18, [#allocation6], %s3061_s19, %s3061_s19, %s3062_s21  }
  0x3f   : > { %s2924_s24 = scalar_lea.hbm %s3671_s7, 8192 }
  0x40   : > { %p2925_p6 = scmp.ne.s32.totalorder %s3671_s7, %s2924_s24  ;;  %p2931_p5 = scmp.lt.u32.totalorder %s2924_s24, %s3671_s7 }
  0x42   : > { %p2927_p10 = pnand %p2925_p6, %p3178_p13 }
  0x44   : > { %p2928_p3 = pneg %p2927_p10 }
  0x46   : > { %p2933_p7 = pnand %p2931_p5, %p2928_p3 }
  0x48   : > { %2936 = shalt.err (!%p2933_p7)
}
  0x49   : > { %s2937_s15 = scalar_lea.vmem %s281_s20, 8192  ;;  %p2945_p1 = scmp.lt.s32.totalorder %s281_s20, %s281_s20 }
  0x4a   : > { %p2938_p9 = scmp.ne.s32.totalorder %s281_s20, %s2937_s15  ;;  %p2946_p2 = scmp.lt.s32.totalorder %s2937_s15, %s2937_s15 }
  0x4c   : > { %p2940_p12 = pnand %p2938_p9, %p3178_p13  ;;  %p2947_p4 = por %p2946_p2, %p2945_p1 }
  0x4e   : > { %p2941_p0 = pneg %p2940_p12 }
  0x50   : > { %p2948_p8 = pnand %p2947_p4, %p2941_p0 }
  0x52   : > { %2951 = shalt.err (!%p2948_p8)
}
  0x53   : > { %2803 = dma.hbm_to_vmem [thread:$0]  (!%p3162_p11), %s3671_s7, 8192, %s281_s20, [#allocation9], %s3061_s19, %s3061_s19, %s3062_s21  }
  0x54   : > { %s3251_s26 = sadd.s32 1, %s3056_s30   ;;  %s33_s12 = sadd.s32 1, %s3052_s29 }
  0x55   : > { %s30_s16 = ssub.s32 %s3056_s30, %s3251_s26  ;;  %p40_p8 = scmp.ne.s32.totalorder %s3052_s29, %s3048_s28 }
  0x56   : > { %p31_p4 = scmp.eq.s32.totalorder %s30_s16, 0  ;;  %p41_p13 = scmp.eq.s32.totalorder %s3056_s30, 0 }
  0x57   : > { %p2815_p6 = scmp.lt.s32.totalorder %s3056_s30, 2  ;;  %p3685_p3 = scmp.eq.s32.totalorder %s3132_s9, 1 }
  0x58   : > { %s3261_s22 = scalar_select %p31_p4, %s3052_s29, %s33_s12  }
  0x59   : > { %p42_p10 = por %p41_p13, %p40_p8  ;;  %p3265_p5 = por %p3685_p3, %p40_p8 }
  0x5a   : > { %s294_s24 = sand.u32 1, %s3052_s29   ;;  %s2128_s25 = sshll.u32 %s3056_s30, 8 }
  0x5b   : > { %s2107_s20 = sshll.u32 %s294_s24, 4  ;;  %s3274_s10 = scalar_lea.hbm %s3664_s0, %s2128_s25 }
  0x5c   : > { %s298_s14 = scalar_lea.vmem [#allocation2], %s2107_s20  ;;  %p3276_p11 = pnand %p2815_p6, %p42_p10 }
  0x5d   : > { %s306_s17 = sshll.u32 %s298_s14, 4  ;;  %s295_s18 = scalar_lea.sflag [#allocation3], %s294_s24  ;;  %s3280_s17 = int_to_ptr.vmem [resolvable:$true] %s306_s17 }
  0x5e   : > { %s2952_s27 = scalar_lea.hbm %s3274_s10, 256  ;;  %p2954_p9 = pneg %p3276_p11 }
  0x5f   : > { %p2953_p7 = scmp.ne.s32.totalorder %s3274_s10, %s2952_s27  ;;  %s2957_s25 = scalar_lea.hbm %s3664_s0, 512 }
  0x60   : > { %p2958_p1 = scmp.lt.u32.totalorder %s3274_s10, %s3664_s0  ;;  %p2959_p2 = scmp.lt.u32.totalorder %s2957_s25, %s2952_s27 }
  0x61   : > { %p2955_p12 = pnand %p2954_p9, %p2953_p7  ;;  %p2961_p8 = scmp.lt.u32.totalorder %s2952_s27, %s3274_s10 }
  0x62   : > { %p2960_p4 = por %p2959_p2, %p2958_p1 }
  0x63   : > { %p2956_p0 = pneg %p2955_p12 }
  0x64   : > { %p2962_p13 = por %p2961_p8, %p2960_p4 }
  0x66   : > { %p2963_p6 = pnand %p2962_p13, %p2956_p0 }
  0x68   : > { %2966 = shalt.err (!%p2963_p6)
}
  0x69   : > { %s2967_s24 = scalar_lea.vmem %s3280_s17, 256  ;;  %s3063_s21 = smov [#allocation2]  }
  0x6a   : > { %p2968_p10 = scmp.ne.s32.totalorder %s3280_s17, %s2967_s24  ;;  %s2972_s14 = sshll.u32 %s3063_s21, 4  ;;  %s2973_s14 = int_to_ptr.vmem [resolvable:$false] %s2972_s14 }
  0x6b   : > { %s2974_s16 = scalar_lea.vmem %s2973_s14, 512  ;;  %p2975_p12 = scmp.lt.s32.totalorder %s3280_s17, %s2973_s14 }
  0x6c   : > { %p2970_p3 = pnand %p2968_p10, %p2954_p9  ;;  %p2976_p1 = scmp.lt.s32.totalorder %s2974_s16, %s2967_s24 }
  0x6e   : > { %p2971_p7 = pneg %p2970_p3  ;;  %p2977_p2 = por %p2976_p1, %p2975_p12 }
  0x70   : > { %p2978_p4 = pnand %p2977_p2, %p2971_p7 }
  0x72   : > { %2981 = shalt.err (!%p2978_p4)
}
  0x73   : > { %2807 = dma.hbm_to_vmem [thread:$0]  (!%p3276_p11), %s3274_s10, 256, %s3280_s17, %s295_s18  }
  0x74   : > { %p3688_p0 = scmp.ne.s32.totalorder %s3682_s13, 0 }
  0x75   : > { %s3310_s27 = sand.u32 (!%p3688_p0), 1, %s3048_s28   ;;  %p3689_p9 = scmp.ne.s32.totalorder (!%p3688_p0), %s3679_s11, 0 }
  0x76   : > { %315 = sbr.rel (%p3688_p0) target bundleno = 2229 (0x8b5), region = 52  ;;  %s2111_s12 = sshll.u32 (!%p3688_p0), %s3310_s27, 4 }
  0x77   : > { %s318_s25 = scalar_lea.sflag (!%p3688_p0), [#allocation3], %s3310_s27  ;;  %s3316_s20 = scalar_lea.vmem (!%p3688_p0), [#allocation2], %s2111_s12 }
  0x7d   : > { %3027 = dma.done.wait (%p3689_p9), %s318_s25, 256  }
  0x7e   : > { %3029 = vsyncadd (%p3689_p9), %s318_s25, 4294967040  ;;  %p3690_p11 = scmp.eq.s32.totalorder %s3132_s9, 0 }
  0x80   : > { %3031 = dma.done.wait (%p3690_p11), [#allocation6], 49152   ;;  %p3691_p8 = pmov %p3690_p11 }
  0x82   : > { %3033 = vsyncadd (%p3691_p8), [#allocation6], 4294918144  ;;  %p3692_p13 = pmov %p3691_p8 }
  0x83   : > { %p3693_p6 = pmov %p3691_p8 }
  0x84   : > { %3035 = dma.done.wait (%p3692_p13), [#allocation9], 8192  }
  0x85   : > { %3037 = vsyncadd (%p3693_p6), [#allocation9], 4294959104  ;;  %v368_v0 = vlaneseq  ;;  %v3064_v1 = vmov 0.0   ;;  %v3337_v6 = vld [vmem:[%s3316_s20 + $0x8] sm:$0xff]  ;;  %v3340_v7 = vld [vmem:[%s3316_s20] sm:$0xff]  ;;  %vm444_vm2 = vcmask 64512  }
  0x86   : > { %512 = vmatprep.mubr.f32.mxu0 %v3064_v1  ;;  %586 = vmatprep.mubr.f32.mxu1 %v3064_v1  ;;  %v594_v10 = vld [vmem:[#allocation5 + $0x8] sm:$0xff]  ;;  %v596_v11 = vld [vmem:[#allocation5 + $0x18] sm:$0xff]  ;;  %v593_v12 = vld [vmem:[#allocation5] sm:$0xff]  ;;  %s2129_s21 = sshll.u32 %s3132_s9, 8  ;;  %s365_s14 = scalar_lea.vmem [#allocation10], %s2111_s12 }
  0x87   : > { %v3332_v2 = vshrl.u32 %v368_v0, 7  ;;  %v371_v3 = vand.u32 127, %v368_v0  ;;  %448 = vmatprep.subr.mxu0 %v3337_v6  ;;  %522 = vmatprep.subr.mxu1 %v3337_v6  ;;  %v595_v13 = vld [vmem:[#allocation5 + $0x10] sm:$0xff]  ;;  %v2130_v14 = vpack.c.bf16 %v596_v11, %v594_v10  ;;  %v598_v16 = vld [vmem:[#allocation5 + $0x28] sm:$0xff]  ;;  %v600_v17 = vld [vmem:[#allocation5 + $0x38] sm:$0xff]  ;;  %s2002_s16 = sshll.u32 %s365_s14, 4  ;;  %s3620_s13 = scalar_lea.hbm %s3672_s8, %s2129_s21  ;;  %s3622_s16 = int_to_ptr.vmem [resolvable:$true] %s2002_s16 }
  0x88   : > { %449 = vmatpush1.msra.mxu0 %v3340_v7  ;;  %523 = vmatpush1.msra.mxu1 %v3340_v7  ;;  %v2132_v15 = vpack.c.bf16 %v595_v13, %v593_v12  ;;  %v597_v18 = vld [vmem:[#allocation5 + $0x20] sm:$0xff]  ;;  %v2134_v19 = vpack.c.bf16 %v600_v17, %v598_v16  ;;  %v599_v20 = vld [vmem:[#allocation5 + $0x30] sm:$0xff]  ;;  %v602_v21 = vld [vmem:[#allocation5 + $0x48] sm:$0xff]  ;;  %s1988_s9 = scalar_lea.sflag [#allocation4], %s3310_s27  ;;  %s2982_s12 = scalar_lea.vmem %s3622_s16, 256 }
  0x89   : > { %v2116_v4 = vadd.s32 4294967295, %v3332_v2  ;;  %v376_v5 = vadd.s32 1, %v3332_v2  ;;  %v604_v22 = vld [vmem:[#allocation5 + $0x58] sm:$0xff]  ;;  %2131 = vmatprep.subr.bf16.mxu0 %v2130_v14  ;;  %v2136_v23 = vpack.c.bf16 %v599_v20, %v597_v18  ;;  %v601_v25 = vld [vmem:[#allocation5 + $0x40] sm:$0xff]  ;;  %v603_v26 = vld [vmem:[#allocation5 + $0x50] sm:$0xff]  ;;  %p2983_p10 = scmp.ne.s32.totalorder %s3622_s16, %s2982_s12 }
  0x8a   : > { %v2138_v24 = vpack.c.bf16 %v604_v22, %v602_v21  ;;  %v606_v27 = vld [vmem:[#allocation5 + $0x68] sm:$0xff]  ;;  %v608_v28 = vld [vmem:[#allocation5 + $0x78] sm:$0xff]  ;;  %v2140_v29 = vpack.c.bf16 %v603_v26, %v601_v25  ;;  %v605_v31 = vld [vmem:[#allocation5 + $0x60] sm:$0xff] }
  0x8b   : > { %vm373_vm0 = vcmp.eq.s32.totalorder %v371_v3, %v2116_v4  ;;  %vm377_vm1 = vcmp.eq.s32.totalorder %v371_v3, %v376_v5  ;;  %v2142_v30 = vpack.c.bf16 %v608_v28, %v606_v27  ;;  %v607_v32 = vld [vmem:[#allocation5 + $0x70] sm:$0xff]  ;;  %v610_v33 = vld [vmem:[#allocation5 + $0x88] sm:$0xff]  ;;  %v612_v34 = vld [vmem:[#allocation5 + $0x98] sm:$0xff]  ;;  %p2984_p3 = pnand %p2983_p10, %p3265_p5 }
  0x8c   : > { %v3343_v8 = vsel %vm373_vm0, 1.0, %v3064_v1  ;;  %v3346_v9 = vsel %vm377_vm1, 1.0, %v3064_v1  ;;  %v2144_v35 = vpack.c.bf16 %v607_v32, %v605_v31  ;;  %v2146_v36 = vpack.c.bf16 %v612_v34, %v610_v33  ;;  %v609_v37 = vld [vmem:[#allocation5 + $0x80] sm:$0xff]  ;;  %v611_v38 = vld [vmem:[#allocation5 + $0x90] sm:$0xff]  ;;  %v614_v39 = vld [vmem:[#allocation5 + $0xa8] sm:$0xff] }
  0x8d   : > { %2119 = vmatmul.mubr.msk.f32.vlgmr.msra.gmra.mrb[0].mxu0 %vm444_vm2, %v3343_v8  ;;  %2120 = vmatmul.mubr.msk.f32.vlgmr.msra.gmra.mrb[0].mxu1 %vm444_vm2, %v3346_v9  ;;  %v616_v40 = vld [vmem:[#allocation5 + $0xb8] sm:$0xff]  ;;  %v2148_v41 = vpack.c.bf16 %v611_v38, %v609_v37  ;;  %v613_v43 = vld [vmem:[#allocation5 + $0xa0] sm:$0xff]  ;;  %v615_v44 = vld [vmem:[#allocation5 + $0xb0] sm:$0xff]  ;;  %p2985_p7 = pneg %p2984_p3 }
  0x8e   : > { %2133 = vmatpush1.bf16.msra.mxu0 %v2132_v15  ;;  %v2150_v42 = vpack.c.bf16 %v616_v40, %v614_v39  ;;  %v618_v45 = vld [vmem:[#allocation5 + $0xc8] sm:$0xff]  ;;  %v620_v46 = vld [vmem:[#allocation5 + $0xd8] sm:$0xff]  ;;  %v2152_v47 = vpack.c.bf16 %v615_v44, %v613_v43  ;;  %v617_v49 = vld [vmem:[#allocation5 + $0xc0] sm:$0xff] }
  0x8f   : > { %2135 = vmatprep.subr.bf16.mxu0 %v2134_v19  ;;  %v2154_v48 = vpack.c.bf16 %v620_v46, %v618_v45  ;;  %v619_v50 = vld [vmem:[#allocation5 + $0xd0] sm:$0xff]  ;;  %v622_v51 = vld [vmem:[#allocation5 + $0xe8] sm:$0xff]  ;;  %v624_v52 = vld [vmem:[#allocation5 + $0xf8] sm:$0xff] }
  0x90   : > { %v2156_v53 = vpack.c.bf16 %v619_v50, %v617_v49  ;;  %v2158_v54 = vpack.c.bf16 %v624_v52, %v622_v51  ;;  %v621_v55 = vld [vmem:[#allocation5 + $0xe0] sm:$0xff]  ;;  %v623_v56 = vld [vmem:[#allocation5 + $0xf0] sm:$0xff]  ;;  %v626_v57 = vld [vmem:[#allocation5 + $0x108] sm:$0xff] }
  0x91   : > { %v628_v58 = vld [vmem:[#allocation5 + $0x118] sm:$0xff]  ;;  %v2160_v59 = vpack.c.bf16 %v623_v56, %v621_v55  ;;  %v625_v61 = vld [vmem:[#allocation5 + $0x100] sm:$0xff]  ;;  %v627_v62 = vld [vmem:[#allocation5 + $0x110] sm:$0xff] }
  0x92   : > { %2137 = vmatpush1.bf16.msra.mxu0 %v2136_v23  ;;  %v2162_v60 = vpack.c.bf16 %v628_v58, %v626_v57  ;;  %v630_v63 = vld [vmem:[#allocation5 + $0x128] sm:$0xff]  ;;  %v632_v0 = vld [vmem:[#allocation5 + $0x138] sm:$0xff]  ;;  %v2164_v3 = vpack.c.bf16 %v627_v62, %v625_v61  ;;  %v629_v5 = vld [vmem:[#allocation5 + $0x120] sm:$0xff] }
  0x93   : > { %2139 = vmatprep.subr.bf16.mxu0 %v2138_v24  ;;  %v2166_v4 = vpack.c.bf16 %v632_v0, %v630_v63  ;;  %v631_v10 = vld [vmem:[#allocation5 + $0x130] sm:$0xff]  ;;  %v634_v11 = vld [vmem:[#allocation5 + $0x148] sm:$0xff]  ;;  %v636_v12 = vld [vmem:[#allocation5 + $0x158] sm:$0xff] }
  0x94   : > { %v2168_v13 = vpack.c.bf16 %v631_v10, %v629_v5  ;;  %v2170_v14 = vpack.c.bf16 %v636_v12, %v634_v11  ;;  %v633_v15 = vld [vmem:[#allocation5 + $0x140] sm:$0xff]  ;;  %v635_v16 = vld [vmem:[#allocation5 + $0x150] sm:$0xff]  ;;  %v638_v17 = vld [vmem:[#allocation5 + $0x168] sm:$0xff] }
  0x95   : > { %v640_v18 = vld [vmem:[#allocation5 + $0x178] sm:$0xff]  ;;  %v2172_v19 = vpack.c.bf16 %v635_v16, %v633_v15  ;;  %v637_v21 = vld [vmem:[#allocation5 + $0x160] sm:$0xff]  ;;  %v639_v22 = vld [vmem:[#allocation5 + $0x170] sm:$0xff] }
  0x96   : > { %2141 = vmatpush1.bf16.msra.mxu0 %v2140_v29  ;;  %v2174_v20 = vpack.c.bf16 %v640_v18, %v638_v17  ;;  %v642_v23 = vld [vmem:[#allocation5 + $0x188] sm:$0xff]  ;;  %v644_v24 = vld [vmem:[#allocation5 + $0x198] sm:$0xff]  ;;  %v2176_v25 = vpack.c.bf16 %v639_v22, %v637_v21  ;;  %v641_v27 = vld [vmem:[#allocation5 + $0x180] sm:$0xff] }
  0x97   : > { %2143 = vmatprep.subr.bf16.mxu0 %v2142_v30  ;;  %v2178_v26 = vpack.c.bf16 %v644_v24, %v642_v23  ;;  %v643_v28 = vld [vmem:[#allocation5 + $0x190] sm:$0xff]  ;;  %v646_v29 = vld [vmem:[#allocation5 + $0x1a8] sm:$0xff]  ;;  %v648_v30 = vld [vmem:[#allocation5 + $0x1b8] sm:$0xff] }
  0x98   : > { %v2180_v31 = vpack.c.bf16 %v643_v28, %v641_v27  ;;  %v2182_v32 = vpack.c.bf16 %v648_v30, %v646_v29  ;;  %v645_v33 = vld [vmem:[#allocation5 + $0x1a0] sm:$0xff]  ;;  %v647_v34 = vld [vmem:[#allocation5 + $0x1b0] sm:$0xff]  ;;  %v660_v49 = vld [vmem:[#allocation5 + $0x218] sm:$0xff] }
  0x99   : > { %v2184_v37 = vpack.c.bf16 %v647_v34, %v645_v33  ;;  %v649_v39 = vld [vmem:[#allocation5 + $0x1c0] sm:$0xff]  ;;  %v651_v40 = vld [vmem:[#allocation5 + $0x1d0] sm:$0xff]  ;;  %v666_v63 = vld [vmem:[#allocation5 + $0x248] sm:$0xff] }
  0x9a   : > { %2145 = vmatpush1.bf16.msra.mxu0 %v2144_v35  ;;  %v650_v35 = vld [vmem:[#allocation5 + $0x1c8] sm:$0xff]  ;;  %v2188_v43 = vpack.c.bf16 %v651_v40, %v649_v39  ;;  %v653_v45 = vld [vmem:[#allocation5 + $0x1e0] sm:$0xff]  ;;  %v655_v46 = vld [vmem:[#allocation5 + $0x1f0] sm:$0xff] }
  0x9b   : > { %2147 = vmatprep.subr.bf16.mxu0 %v2146_v36  ;;  %v652_v36 = vld [vmem:[#allocation5 + $0x1d8] sm:$0xff]  ;;  %v657_v51 = vld [vmem:[#allocation5 + $0x200] sm:$0xff]  ;;  %v659_v52 = vld [vmem:[#allocation5 + $0x210] sm:$0xff] }
  0x9c   : > { %v2186_v38 = vpack.c.bf16 %v652_v36, %v650_v35  ;;  %v2196_v56 = vpack.c.bf16 %v659_v52, %v657_v51  ;;  %v663_v61 = vld [vmem:[#allocation5 + $0x230] sm:$0xff]  ;;  %v668_v0 = vld [vmem:[#allocation5 + $0x258] sm:$0xff]  ;;  %v381_v5 = vld [vmem:[#allocation8 + $0x8] sm:$0xff] }
  0x9d   : > { %v383_v10 = vld [vmem:[#allocation8 + $0x18] sm:$0xff]  ;;  %v380_v11 = vld [vmem:[#allocation8] sm:$0xff]  ;;  %v385_v15 = vld [vmem:[#allocation8 + $0x28] sm:$0xff]  ;;  %v2202_v17 = vpack.c.bf16 %v668_v0, %v666_v63 }
  0x9e   : > { %2149 = vmatpush1.bf16.msra.mxu0 %v2148_v41  ;;  %v654_v41 = vld [vmem:[#allocation5 + $0x1e8] sm:$0xff]  ;;  %v387_v16 = vld [vmem:[#allocation8 + $0x38] sm:$0xff]  ;;  %v386_v21 = vld [vmem:[#allocation8 + $0x30] sm:$0xff] }
  0x9f   : > { %2151 = vmatprep.subr.bf16.mxu0 %v2150_v42  ;;  %v656_v42 = vld [vmem:[#allocation5 + $0x1f8] sm:$0xff]  ;;  %v389_v22 = vld [vmem:[#allocation8 + $0x48] sm:$0xff]  ;;  %v669_v27 = vld [vmem:[#allocation5 + $0x260] sm:$0xff] }
  0xa0   : > { %v2190_v44 = vpack.c.bf16 %v656_v42, %v654_v41  ;;  %v670_v23 = vld [vmem:[#allocation5 + $0x268] sm:$0xff]  ;;  %v672_v24 = vld [vmem:[#allocation5 + $0x278] sm:$0xff]  ;;  %v388_v29 = vld [vmem:[#allocation8 + $0x40] sm:$0xff] }
  0xa1   : > { %v390_v30 = vld [vmem:[#allocation8 + $0x50] sm:$0xff]  ;;  %v393_v33 = vld [vmem:[#allocation8 + $0x68] sm:$0xff]  ;;  %v395_v34 = vld [vmem:[#allocation8 + $0x78] sm:$0xff] }
  0xa2   : > { %2153 = vmatpush1.bf16.msra.mxu0 %v2152_v47  ;;  %v2192_v47 = vpack.c.bf16 %v655_v46, %v653_v45  ;;  %v674_v35 = vld [vmem:[#allocation5 + $0x288] sm:$0xff]  ;;  %v676_v36 = vld [vmem:[#allocation5 + $0x298] sm:$0xff]  ;;  %v673_v39 = vld [vmem:[#allocation5 + $0x280] sm:$0xff]  ;;  %v3378_v40 = vpack.c.bf16 %v395_v34, %v393_v33 }
  0xa3   : > { %2155 = vmatprep.subr.bf16.mxu0 %v2154_v48  ;;  %v658_v48 = vld [vmem:[#allocation5 + $0x208] sm:$0xff]  ;;  %v392_v41 = vld [vmem:[#allocation8 + $0x60] sm:$0xff]  ;;  %v394_v42 = vld [vmem:[#allocation8 + $0x70] sm:$0xff] }
  0xa4   : > { %v2194_v50 = vpack.c.bf16 %v660_v49, %v658_v48  ;;  %v397_v45 = vld [vmem:[#allocation8 + $0x88] sm:$0xff]  ;;  %v399_v46 = vld [vmem:[#allocation8 + $0x98] sm:$0xff]  ;;  %v3381_v49 = vpack.c.bf16 %v394_v42, %v392_v41  ;;  %v677_v51 = vld [vmem:[#allocation5 + $0x2a0] sm:$0xff] }
  0xa5   : > { %v680_v48 = vld [vmem:[#allocation5 + $0x2b8] sm:$0xff]  ;;  %v3384_v52 = vpack.c.bf16 %v399_v46, %v397_v45  ;;  %v691_v42 = vld [vmem:[#allocation5 + $0x310] sm:$0xff]  ;;  %v694_v45 = vld [vmem:[#allocation5 + $0x328] sm:$0xff] }
  0xa6   : > { %2157 = vmatpush1.bf16.msra.mxu0 %v2156_v53  ;;  %v662_v53 = vld [vmem:[#allocation5 + $0x228] sm:$0xff]  ;;  %v696_v46 = vld [vmem:[#allocation5 + $0x338] sm:$0xff] }
  0xa7   : > { %2159 = vmatprep.subr.bf16.mxu0 %v2158_v54  ;;  %v664_v54 = vld [vmem:[#allocation5 + $0x238] sm:$0xff] }
  0xaa   : > { %2161 = vmatpush1.bf16.msra.mxu0 %v2160_v59  ;;  %v2198_v59 = vpack.c.bf16 %v664_v54, %v662_v53  ;;  %v396_v53 = vld [vmem:[#allocation8 + $0x80] sm:$0xff]  ;;  %v398_v54 = vld [vmem:[#allocation8 + $0x90] sm:$0xff] }
  0xab   : > { %2163 = vmatprep.subr.bf16.mxu0 %v2162_v60  ;;  %v661_v60 = vld [vmem:[#allocation5 + $0x220] sm:$0xff]  ;;  %v3387_v63 = vpack.c.bf16 %v398_v54, %v396_v53  ;;  %v414_v54 = vld [vmem:[#allocation8 + $0x110] sm:$0xff] }
  0xac   : > { %v2200_v12 = vpack.c.bf16 %v663_v61, %v661_v60  ;;  %v682_v60 = vld [vmem:[#allocation5 + $0x2c8] sm:$0xff]  ;;  %v684_v61 = vld [vmem:[#allocation5 + $0x2d8] sm:$0xff]  ;;  %v412_v53 = vld [vmem:[#allocation8 + $0x100] sm:$0xff] }
  0xae   : > { %2165 = vmatpush1.bf16.msra.mxu0 %v2164_v3  ;;  %v665_v3 = vld [vmem:[#allocation5 + $0x240] sm:$0xff] }
  0xaf   : > { %2167 = vmatprep.subr.bf16.mxu0 %v2166_v4  ;;  %v667_v4 = vld [vmem:[#allocation5 + $0x250] sm:$0xff] }
  0xb2   : > { %2169 = vmatpush1.bf16.msra.mxu0 %v2168_v13  ;;  %v3361_v13 = vpack.c.bf16 %v383_v10, %v381_v5  ;;  %v400_v5 = vld [vmem:[#allocation8 + $0xa0] sm:$0xff]  ;;  %v402_v10 = vld [vmem:[#allocation8 + $0xb0] sm:$0xff] }
  0xb3   : > { %2171 = vmatprep.subr.bf16.mxu0 %v2170_v14  ;;  %v382_v14 = vld [vmem:[#allocation8 + $0x10] sm:$0xff] }
  0xb4   : > { %v3363_v18 = vpack.c.bf16 %v382_v14, %v380_v11  ;;  %2323 = vmatprep.subr.bf16.mxu1 %v3361_v13  ;;  %v2218_v11 = vpack.c.bf16 %v684_v61, %v682_v60  ;;  %v405_v14 = vld [vmem:[#allocation8 + $0xc8] sm:$0xff]  ;;  %v700_v61 = vld [vmem:[#allocation5 + $0x358] sm:$0xff] }
  0xb5   : > { %v698_v60 = vld [vmem:[#allocation5 + $0x348] sm:$0xff] }
  0xb6   : > { %2173 = vmatpush1.bf16.msra.mxu0 %v2172_v19  ;;  %v3365_v19 = vpack.c.bf16 %v387_v16, %v385_v15  ;;  %2325 = vmatpush1.bf16.msra.mxu1 %v3363_v18  ;;  %v407_v15 = vld [vmem:[#allocation8 + $0xd8] sm:$0xff]  ;;  %v686_v16 = vld [vmem:[#allocation5 + $0x2e8] sm:$0xff] }
  0xb7   : > { %2175 = vmatprep.subr.bf16.mxu0 %v2174_v20  ;;  %v384_v20 = vld [vmem:[#allocation8 + $0x20] sm:$0xff] }
  0xb8   : > { %2327 = vmatprep.subr.bf16.mxu1 %v3365_v19 }
  0xba   : > { %2177 = vmatpush1.bf16.msra.mxu0 %v2176_v25  ;;  %v391_v25 = vld [vmem:[#allocation8 + $0x58] sm:$0xff] }
  0xbb   : > { %2179 = vmatprep.subr.bf16.mxu0 %v2178_v26  ;;  %v2204_v26 = vpack.c.bf16 %v667_v4, %v665_v3  ;;  %v3372_v28 = vpack.c.bf16 %v391_v25, %v389_v22  ;;  %v681_v3 = vld [vmem:[#allocation5 + $0x2c0] sm:$0xff]  ;;  %v406_v25 = vld [vmem:[#allocation8 + $0xd0] sm:$0xff] }
  0xbc   : > { %v685_v22 = vld [vmem:[#allocation5 + $0x2e0] sm:$0xff] }
  0xbe   : > { %2181 = vmatpush1.bf16.msra.mxu0 %v2180_v31  ;;  %v2206_v31 = vpack.c.bf16 %v672_v24, %v670_v23  ;;  %v3396_v23 = vpack.c.bf16 %v407_v15, %v405_v14  ;;  %v404_v24 = vld [vmem:[#allocation8 + $0xc0] sm:$0xff]  ;;  %v2234_v14 = vpack.c.bf16 %v700_v61, %v698_v60  ;;  %v699_v15 = vld [vmem:[#allocation5 + $0x350] sm:$0xff] }
  0xbf   : > { %2183 = vmatprep.subr.bf16.mxu0 %v2182_v32  ;;  %v671_v32 = vld [vmem:[#allocation5 + $0x270] sm:$0xff]  ;;  %v3399_v33 = vpack.c.bf16 %v406_v25, %v404_v24 }
  0xc2   : > { %2185 = vmatpush1.bf16.msra.mxu0 %v2184_v37  ;;  %v3375_v37 = vpack.c.bf16 %v390_v30, %v388_v29  ;;  %v409_v29 = vld [vmem:[#allocation8 + $0xe8] sm:$0xff]  ;;  %v411_v30 = vld [vmem:[#allocation8 + $0xf8] sm:$0xff] }
  0xc3   : > { %2187 = vmatprep.subr.bf16.mxu0 %v2186_v38  ;;  %v2208_v38 = vpack.c.bf16 %v671_v32, %v669_v27  ;;  %v687_v27 = vld [vmem:[#allocation5 + $0x2f0] sm:$0xff]  ;;  %v692_v32 = vld [vmem:[#allocation5 + $0x318] sm:$0xff] }
  0xc4   : > { %v2224_v34 = vpack.c.bf16 %v687_v27, %v685_v22  ;;  %v704_v22 = vld [vmem:[#allocation5 + $0x378] sm:$0xff] }
  0xc6   : > { %2189 = vmatpush1.bf16.msra.mxu0 %v2188_v43  ;;  %v2210_v43 = vpack.c.bf16 %v676_v36, %v674_v35  ;;  %v689_v35 = vld [vmem:[#allocation5 + $0x300] sm:$0xff]  ;;  %v3402_v36 = vpack.c.bf16 %v411_v30, %v409_v29  ;;  %v422_v30 = vld [vmem:[#allocation8 + $0x150] sm:$0xff] }
  0xc7   : > { %2191 = vmatprep.subr.bf16.mxu0 %v2190_v44  ;;  %v675_v44 = vld [vmem:[#allocation5 + $0x290] sm:$0xff]  ;;  %v420_v29 = vld [vmem:[#allocation8 + $0x140] sm:$0xff] }
  0xca   : > { %2193 = vmatpush1.bf16.msra.mxu0 %v2192_v47  ;;  %v678_v47 = vld [vmem:[#allocation5 + $0x2a8] sm:$0xff] }
  0xcb   : > { %2195 = vmatprep.subr.bf16.mxu0 %v2194_v50  ;;  %v2212_v50 = vpack.c.bf16 %v675_v44, %v673_v39  ;;  %v410_v39 = vld [vmem:[#allocation8 + $0xf0] sm:$0xff]  ;;  %v415_v44 = vld [vmem:[#allocation8 + $0x118] sm:$0xff] }
 0x160   : > { %v514_v55 = vpop.f32.mrb[0].mxu0  ;;  %v3356_v57 = vpop.f32.mrb[0].mxu1 }
 0x161   : > { %v516_v58 = vpop.f32.mrb[1].mxu0  ;;  %v3358_v62 = vpop.f32.mrb[1].mxu1 }
 0x162   : > { %849 = vmatprep.mubr.f32.mxu0 %v516_v58  ;;  %v401_v58 = vld [vmem:[#allocation8 + $0xa8] sm:$0xff] }
 0x163   : > { %850 = vmatmul.mubr.f32.vlgmr.msra.gmra.mrb[2].mxu0 %v514_v55  ;;  %v2214_v55 = vpack.c.bf16 %v680_v48, %v678_v47  ;;  %v2228_v48 = vpack.c.bf16 %v691_v42, %v689_v35  ;;  %v427_v35 = vld [vmem:[#allocation8 + $0x178] sm:$0xff] }
 0x164   : > { %2197 = vmatpush1.bf16.msra.mxu0 %v2196_v56  ;;  %920 = vmatprep.mubr.f32.mxu0 %v3337_v6  ;;  %v3369_v6 = vpack.c.bf16 %v386_v21, %v384_v20  ;;  %v679_v56 = vld [vmem:[#allocation5 + $0x2b0] sm:$0xff]  ;;  %v3393_v20 = vpack.c.bf16 %v402_v10, %v400_v5  ;;  %v697_v5 = vld [vmem:[#allocation5 + $0x340] sm:$0xff] }
 0x165   : > { %2199 = vmatprep.subr.bf16.mxu0 %v2198_v59  ;;  %v403_v59 = vld [vmem:[#allocation8 + $0xb8] sm:$0xff]  ;;  %v2216_v0 = vpack.c.bf16 %v679_v56, %v677_v51  ;;  %v695_v56 = vld [vmem:[#allocation5 + $0x330] sm:$0xff]  ;;  %v2236_v25 = vpack.c.bf16 %v699_v15, %v697_v5 }
 0x166   : > { %2329 = vmatpush1.bf16.msra.mxu1 %v3369_v6  ;;  %v3390_v4 = vpack.c.bf16 %v403_v59, %v401_v58  ;;  %v417_v58 = vld [vmem:[#allocation8 + $0x128] sm:$0xff]  ;;  %v419_v59 = vld [vmem:[#allocation8 + $0x138] sm:$0xff]  ;;  %v711_v5 = vld [vmem:[#allocation5 + $0x3b0] sm:$0xff] }
 0x167   : > { %2331 = vmatprep.subr.bf16.mxu1 %v3372_v28  ;;  %v3414_v10 = vpack.c.bf16 %v419_v59, %v417_v58 }
 0x168   : > { %2201 = vmatpush1.bf16.msra.mxu0 %v2200_v12  ;;  %v683_v12 = vld [vmem:[#allocation5 + $0x2d0] sm:$0xff] }
 0x169   : > { %2203 = vmatprep.subr.bf16.mxu0 %v2202_v17  ;;  %v688_v17 = vld [vmem:[#allocation5 + $0x2f8] sm:$0xff]  ;;  %v2220_v21 = vpack.c.bf16 %v683_v12, %v681_v3  ;;  %v418_v12 = vld [vmem:[#allocation8 + $0x130] sm:$0xff] }
 0x16a   : > { %2333 = vmatpush1.bf16.msra.mxu1 %v3375_v37 }
 0x16b   : > { %2335 = vmatprep.subr.bf16.mxu1 %v3378_v40 }
 0x16c   : > { %2205 = vmatpush1.bf16.msra.mxu0 %v2204_v26  ;;  %v2222_v26 = vpack.c.bf16 %v688_v17, %v686_v16  ;;  %v421_v16 = vld [vmem:[#allocation8 + $0x148] sm:$0xff]  ;;  %v423_v17 = vld [vmem:[#allocation8 + $0x158] sm:$0xff] }
 0x16d   : > { %2207 = vmatprep.subr.bf16.mxu0 %v2206_v31  ;;  %v690_v31 = vld [vmem:[#allocation5 + $0x308] sm:$0xff]  ;;  %v3420_v27 = vpack.c.bf16 %v423_v17, %v421_v16  ;;  %v713_v16 = vld [vmem:[#allocation5 + $0x3c0] sm:$0xff]  ;;  %v715_v17 = vld [vmem:[#allocation5 + $0x3d0] sm:$0xff] }
 0x16e   : > { %2337 = vmatpush1.bf16.msra.mxu1 %v3381_v49  ;;  %v2226_v41 = vpack.c.bf16 %v692_v32, %v690_v31  ;;  %v703_v32 = vld [vmem:[#allocation5 + $0x370] sm:$0xff] }
 0x16f   : > { %2339 = vmatprep.subr.bf16.mxu1 %v3384_v52 }
 0x170   : > { %2209 = vmatpush1.bf16.msra.mxu0 %v2208_v38  ;;  %v408_v38 = vld [vmem:[#allocation8 + $0xe0] sm:$0xff] }
 0x171   : > { %2211 = vmatprep.subr.bf16.mxu0 %v2210_v43  ;;  %v413_v43 = vld [vmem:[#allocation8 + $0x108] sm:$0xff]  ;;  %v3405_v47 = vpack.c.bf16 %v410_v39, %v408_v38  ;;  %v708_v39 = vld [vmem:[#allocation5 + $0x398] sm:$0xff] }
 0x172   : > { %2341 = vmatpush1.bf16.msra.mxu1 %v3387_v63  ;;  %v3408_v51 = vpack.c.bf16 %v415_v44, %v413_v43  ;;  %v706_v38 = vld [vmem:[#allocation5 + $0x388] sm:$0xff]  ;;  %v705_v43 = vld [vmem:[#allocation5 + $0x380] sm:$0xff] }
 0x173   : > { %2343 = vmatprep.subr.bf16.mxu1 %v3390_v4 }
 0x174   : > { %2213 = vmatpush1.bf16.msra.mxu0 %v2212_v50  ;;  %v693_v50 = vld [vmem:[#allocation5 + $0x320] sm:$0xff] }
 0x175   : > { %2215 = vmatprep.subr.bf16.mxu0 %v2214_v55  ;;  %v2230_v55 = vpack.c.bf16 %v696_v46, %v694_v45  ;;  %v2232_v3 = vpack.c.bf16 %v695_v56, %v693_v50  ;;  %v424_v45 = vld [vmem:[#allocation8 + $0x160] sm:$0xff]  ;;  %v426_v46 = vld [vmem:[#allocation8 + $0x170] sm:$0xff]  ;;  %v712_v56 = vld [vmem:[#allocation5 + $0x3b8] sm:$0xff] }
 0x176   : > { %2345 = vmatpush1.bf16.msra.mxu1 %v3393_v20  ;;  %v707_v50 = vld [vmem:[#allocation5 + $0x390] sm:$0xff]  ;;  %v3429_v58 = vpack.c.bf16 %v426_v46, %v424_v45 }
 0x177   : > { %2347 = vmatprep.subr.bf16.mxu1 %v3396_v23  ;;  %v2244_v59 = vpack.c.bf16 %v707_v50, %v705_v43  ;;  %v728_v43 = vld [vmem:[#allocation5 + $0x438] sm:$0xff]  ;;  %v727_v50 = vld [vmem:[#allocation5 + $0x430] sm:$0xff] }
 0x178   : > { %2217 = vmatpush1.bf16.msra.mxu0 %v2216_v0  ;;  %v3411_v0 = vpack.c.bf16 %v414_v54, %v412_v53  ;;  %v429_v53 = vld [vmem:[#allocation8 + $0x188] sm:$0xff]  ;;  %v431_v54 = vld [vmem:[#allocation8 + $0x198] sm:$0xff] }
 0x179   : > { %2219 = vmatprep.subr.bf16.mxu0 %v2218_v11  ;;  %v416_v11 = vld [vmem:[#allocation8 + $0x120] sm:$0xff]  ;;  %v3432_v60 = vpack.c.bf16 %v431_v54, %v429_v53  ;;  %v730_v53 = vld [vmem:[#allocation5 + $0x448] sm:$0xff]  ;;  %v732_v54 = vld [vmem:[#allocation5 + $0x458] sm:$0xff] }
 0x17a   : > { %2349 = vmatpush1.bf16.msra.mxu1 %v3399_v33  ;;  %v3417_v24 = vpack.c.bf16 %v418_v12, %v416_v11  ;;  %v714_v11 = vld [vmem:[#allocation5 + $0x3c8] sm:$0xff]  ;;  %v716_v12 = vld [vmem:[#allocation5 + $0x3d8] sm:$0xff] }
 0x17b   : > { %2351 = vmatprep.subr.bf16.mxu1 %v3402_v36  ;;  %v2250_v15 = vpack.c.bf16 %v716_v12, %v714_v11 }
 0x17c   : > { %2221 = vmatpush1.bf16.msra.mxu0 %v2220_v21  ;;  %v702_v21 = vld [vmem:[#allocation5 + $0x368] sm:$0xff] }
 0x17d   : > { %2223 = vmatprep.subr.bf16.mxu0 %v2222_v26  ;;  %v701_v26 = vld [vmem:[#allocation5 + $0x360] sm:$0xff]  ;;  %v2238_v31 = vpack.c.bf16 %v704_v22, %v702_v21  ;;  %v718_v21 = vld [vmem:[#allocation5 + $0x3e8] sm:$0xff]  ;;  %v720_v22 = vld [vmem:[#allocation5 + $0x3f8] sm:$0xff] }
 0x17e   : > { %2353 = vmatpush1.bf16.msra.mxu1 %v3405_v47  ;;  %v2240_v42 = vpack.c.bf16 %v703_v32, %v701_v26  ;;  %v2254_v26 = vpack.c.bf16 %v720_v22, %v718_v21  ;;  %v724_v32 = vld [vmem:[#allocation5 + $0x418] sm:$0xff]  ;;  %v737_v22 = vld [vmem:[#allocation5 + $0x480] sm:$0xff] }
 0x17f   : > { %2355 = vmatprep.subr.bf16.mxu1 %v3408_v51 }
 0x180   : > { %2225 = vmatpush1.bf16.msra.mxu0 %v2224_v34  ;;  %v425_v34 = vld [vmem:[#allocation8 + $0x168] sm:$0xff] }
 0x181   : > { %2227 = vmatprep.subr.bf16.mxu0 %v2226_v41  ;;  %v3423_v41 = vpack.c.bf16 %v422_v30, %v420_v29  ;;  %v3426_v44 = vpack.c.bf16 %v427_v35, %v425_v34  ;;  %v717_v29 = vld [vmem:[#allocation5 + $0x3e0] sm:$0xff]  ;;  %v719_v30 = vld [vmem:[#allocation5 + $0x3f0] sm:$0xff] }
 0x182   : > { %2357 = vmatpush1.bf16.msra.mxu1 %v3411_v0  ;;  %v2256_v34 = vpack.c.bf16 %v719_v30, %v717_v29 }
 0x183   : > { %2359 = vmatprep.subr.bf16.mxu1 %v3414_v10 }
 0x184   : > { %2229 = vmatpush1.bf16.msra.mxu0 %v2228_v48  ;;  %v2242_v48 = vpack.c.bf16 %v708_v39, %v706_v38  ;;  %v721_v38 = vld [vmem:[#allocation5 + $0x400] sm:$0xff]  ;;  %v723_v39 = vld [vmem:[#allocation5 + $0x410] sm:$0xff] }
 0x185   : > { %2231 = vmatprep.subr.bf16.mxu0 %v2230_v55  ;;  %v710_v55 = vld [vmem:[#allocation5 + $0x3a8] sm:$0xff]  ;;  %v2260_v45 = vpack.c.bf16 %v723_v39, %v721_v38 }
 0x186   : > { %2361 = vmatpush1.bf16.msra.mxu1 %v3417_v24  ;;  %v2246_v61 = vpack.c.bf16 %v712_v56, %v710_v55  ;;  %v2266_v56 = vpack.c.bf16 %v732_v54, %v730_v53  ;;  %v749_v53 = vld [vmem:[#allocation5 + $0x4e0] sm:$0xff]  ;;  %v751_v54 = vld [vmem:[#allocation5 + $0x4f0] sm:$0xff] }
 0x187   : > { %2363 = vmatprep.subr.bf16.mxu1 %v3420_v27 }
 0x188   : > { %2233 = vmatpush1.bf16.msra.mxu0 %v2232_v3  ;;  %v709_v3 = vld [vmem:[#allocation5 + $0x3a0] sm:$0xff] }
 0x189   : > { %2235 = vmatprep.subr.bf16.mxu0 %v2234_v14  ;;  %v2248_v14 = vpack.c.bf16 %v711_v5, %v709_v3  ;;  %v734_v3 = vld [vmem:[#allocation5 + $0x468] sm:$0xff]  ;;  %v736_v5 = vld [vmem:[#allocation5 + $0x478] sm:$0xff] }
 0x18a   : > { %2365 = vmatpush1.bf16.msra.mxu1 %v3423_v41  ;;  %v2270_v12 = vpack.c.bf16 %v736_v5, %v734_v3  ;;  %v753_v3 = vld [vmem:[#allocation5 + $0x500] sm:$0xff]  ;;  %v755_v5 = vld [vmem:[#allocation5 + $0x510] sm:$0xff] }
 0x18b   : > { %2367 = vmatprep.subr.bf16.mxu1 %v3426_v44 }
 0x18c   : > { %2237 = vmatpush1.bf16.msra.mxu0 %v2236_v25  ;;  %v2252_v25 = vpack.c.bf16 %v715_v17, %v713_v16  ;;  %v738_v16 = vld [vmem:[#allocation5 + $0x488] sm:$0xff]  ;;  %v740_v17 = vld [vmem:[#allocation5 + $0x498] sm:$0xff] }
 0x18d   : > { %2239 = vmatprep.subr.bf16.mxu0 %v2238_v31  ;;  %v722_v31 = vld [vmem:[#allocation5 + $0x408] sm:$0xff]  ;;  %v2274_v21 = vpack.c.bf16 %v740_v17, %v738_v16  ;;  %v757_v16 = vld [vmem:[#allocation5 + $0x520] sm:$0xff]  ;;  %v759_v17 = vld [vmem:[#allocation5 + $0x530] sm:$0xff] }
 0x18e   : > { %2369 = vmatpush1.bf16.msra.mxu1 %v3429_v58  ;;  %v2258_v35 = vpack.c.bf16 %v724_v32, %v722_v31  ;;  %v741_v31 = vld [vmem:[#allocation5 + $0x4a0] sm:$0xff]  ;;  %v743_v32 = vld [vmem:[#allocation5 + $0x4b0] sm:$0xff] }
 0x18f   : > { %2371 = vmatprep.subr.bf16.mxu1 %v3432_v60  ;;  %v2280_v38 = vpack.c.bf16 %v743_v32, %v741_v31 }
 0x190   : > { %2241 = vmatpush1.bf16.msra.mxu0 %v2240_v42  ;;  %v726_v42 = vld [vmem:[#allocation5 + $0x428] sm:$0xff] }
 0x191   : > { %2243 = vmatprep.subr.bf16.mxu0 %v2242_v48  ;;  %v2262_v46 = vpack.c.bf16 %v728_v43, %v726_v42  ;;  %v725_v48 = vld [vmem:[#allocation5 + $0x420] sm:$0xff]  ;;  %v747_v43 = vld [vmem:[#allocation5 + $0x4d0] sm:$0xff] }
 0x192   : > { %v2264_v55 = vpack.c.bf16 %v727_v50, %v725_v48  ;;  %v745_v42 = vld [vmem:[#allocation5 + $0x4c0] sm:$0xff] }
 0x193   : > { %v2284_v48 = vpack.c.bf16 %v747_v43, %v745_v42 }
 0x194   : > { %2245 = vmatpush1.bf16.msra.mxu0 %v2244_v59  ;;  %v729_v59 = vld [vmem:[#allocation5 + $0x440] sm:$0xff] }
 0x195   : > { %2247 = vmatprep.subr.bf16.mxu0 %v2246_v61  ;;  %v731_v61 = vld [vmem:[#allocation5 + $0x450] sm:$0xff] }
 0x196   : > { %v2268_v11 = vpack.c.bf16 %v731_v61, %v729_v59  ;;  %v2288_v59 = vpack.c.bf16 %v751_v54, %v749_v53 }
 0x198   : > { %2249 = vmatpush1.bf16.msra.mxu0 %v2248_v14  ;;  %v733_v14 = vld [vmem:[#allocation5 + $0x460] sm:$0xff] }
 0x199   : > { %2251 = vmatprep.subr.bf16.mxu0 %v2250_v15  ;;  %v735_v15 = vld [vmem:[#allocation5 + $0x470] sm:$0xff] }
 0x19c   : > { %2253 = vmatpush1.bf16.msra.mxu0 %v2252_v25  ;;  %v742_v25 = vld [vmem:[#allocation5 + $0x4a8] sm:$0xff] }
 0x19d   : > { %2255 = vmatprep.subr.bf16.mxu0 %v2254_v26  ;;  %v744_v26 = vld [vmem:[#allocation5 + $0x4b8] sm:$0xff] }
 0x19e   : > { %v2278_v30 = vpack.c.bf16 %v744_v26, %v742_v25  ;;  %v761_v25 = vld [vmem:[#allocation5 + $0x540] sm:$0xff]  ;;  %v763_v26 = vld [vmem:[#allocation5 + $0x550] sm:$0xff] }
 0x19f   : > { %v2300_v31 = vpack.c.bf16 %v763_v26, %v761_v25  ;;  %v430_v25 = vld [vmem:[#allocation8 + $0x190] sm:$0xff] }
 0x1a0   : > { %2257 = vmatpush1.bf16.msra.mxu0 %v2256_v34  ;;  %v746_v34 = vld [vmem:[#allocation5 + $0x4c8] sm:$0xff] }
 0x1a1   : > { %2259 = vmatprep.subr.bf16.mxu0 %v2258_v35  ;;  %v748_v35 = vld [vmem:[#allocation5 + $0x4d8] sm:$0xff] }
 0x1a2   : > { %v2282_v39 = vpack.c.bf16 %v748_v35, %v746_v34  ;;  %v765_v34 = vld [vmem:[#allocation5 + $0x560] sm:$0xff]  ;;  %v767_v35 = vld [vmem:[#allocation5 + $0x570] sm:$0xff] }
 0x1a3   : > { %921 = vmatmul.mubr.f32.vlgmr.msra.gmra.mrb[2].mxu0 %v3340_v7  ;;  %v2272_v7 = vpack.c.bf16 %v735_v15, %v733_v14  ;;  %v2292_v14 = vpack.c.bf16 %v755_v5, %v753_v3  ;;  %v2304_v42 = vpack.c.bf16 %v767_v35, %v765_v34  ;;  %v434_v34 = vld [vmem:[#allocation8 + $0x1b0] sm:$0xff] }
 0x1a4   : > { %2261 = vmatpush1.bf16.msra.mxu0 %v2260_v45  ;;  %991 = vmatprep.mubr.f32.mxu0 %v3358_v62  ;;  %v739_v62 = vld [vmem:[#allocation5 + $0x490] sm:$0xff]  ;;  %v750_v45 = vld [vmem:[#allocation5 + $0x4e8] sm:$0xff] }
 0x1a5   : > { %2263 = vmatprep.subr.bf16.mxu0 %v2262_v46  ;;  %v2276_v29 = vpack.c.bf16 %v739_v62, %v737_v22  ;;  %v752_v46 = vld [vmem:[#allocation5 + $0x4f8] sm:$0xff]  ;;  %v2296_v22 = vpack.c.bf16 %v759_v17, %v757_v16 }
 0x1a6   : > { %v2286_v50 = vpack.c.bf16 %v752_v46, %v750_v45  ;;  %v769_v45 = vld [vmem:[#allocation5 + $0x580] sm:$0xff]  ;;  %v771_v46 = vld [vmem:[#allocation5 + $0x590] sm:$0xff] }
 0x1a7   : > { %v2308_v53 = vpack.c.bf16 %v771_v46, %v769_v45  ;;  %v441_v46 = vld [vmem:[#allocation8 + $0x1e8] sm:$0xff] }
 0x1a8   : > { %2265 = vmatpush1.bf16.msra.mxu0 %v2264_v55  ;;  %v754_v55 = vld [vmem:[#allocation5 + $0x508] sm:$0xff] }
 0x1a9   : > { %2267 = vmatprep.subr.bf16.mxu0 %v2266_v56  ;;  %v756_v56 = vld [vmem:[#allocation5 + $0x518] sm:$0xff] }
 0x1aa   : > { %v2290_v61 = vpack.c.bf16 %v756_v56, %v754_v55  ;;  %v773_v55 = vld [vmem:[#allocation5 + $0x5a0] sm:$0xff]  ;;  %v775_v56 = vld [vmem:[#allocation5 + $0x5b0] sm:$0xff] }
 0x1ab   : > { %v2312_v3 = vpack.c.bf16 %v775_v56, %v773_v55 }
 0x1ac   : > { %2269 = vmatpush1.bf16.msra.mxu0 %v2268_v11  ;;  %v758_v11 = vld [vmem:[#allocation5 + $0x528] sm:$0xff] }
 0x1ad   : > { %2271 = vmatprep.subr.bf16.mxu0 %v2270_v12  ;;  %v760_v12 = vld [vmem:[#allocation5 + $0x538] sm:$0xff] }
 0x1ae   : > { %v2294_v15 = vpack.c.bf16 %v760_v12, %v758_v11  ;;  %v777_v11 = vld [vmem:[#allocation5 + $0x5c0] sm:$0xff]  ;;  %v779_v12 = vld [vmem:[#allocation5 + $0x5d0] sm:$0xff] }
 0x1af   : > { %v2316_v16 = vpack.c.bf16 %v779_v12, %v777_v11 }
 0x1b0   : > { %2273 = vmatpush1.bf16.msra.mxu0 %v2272_v7  ;;  %v762_v7 = vld [vmem:[#allocation5 + $0x548] sm:$0xff] }
 0x1b1   : > { %2275 = vmatprep.subr.bf16.mxu0 %v2274_v21  ;;  %v764_v21 = vld [vmem:[#allocation5 + $0x558] sm:$0xff] }
 0x1b2   : > { %v2298_v62 = vpack.c.bf16 %v764_v21, %v762_v7  ;;  %v781_v7 = vld [vmem:[#allocation5 + $0x5e0] sm:$0xff]  ;;  %v783_v21 = vld [vmem:[#allocation5 + $0x5f0] sm:$0xff] }
 0x1b4   : > { %2277 = vmatpush1.bf16.msra.mxu0 %v2276_v29  ;;  %v766_v29 = vld [vmem:[#allocation5 + $0x568] sm:$0xff] }
 0x1b5   : > { %2279 = vmatprep.subr.bf16.mxu0 %v2278_v30  ;;  %v768_v30 = vld [vmem:[#allocation5 + $0x578] sm:$0xff] }
 0x1b6   : > { %v2302_v32 = vpack.c.bf16 %v768_v30, %v766_v29  ;;  %v433_v29 = vld [vmem:[#allocation8 + $0x1a8] sm:$0xff]  ;;  %v435_v30 = vld [vmem:[#allocation8 + $0x1b8] sm:$0xff] }
 0x1b8   : > { %2281 = vmatpush1.bf16.msra.mxu0 %v2280_v38  ;;  %v770_v38 = vld [vmem:[#allocation5 + $0x588] sm:$0xff] }
 0x1b9   : > { %2283 = vmatprep.subr.bf16.mxu0 %v2282_v39  ;;  %v772_v39 = vld [vmem:[#allocation5 + $0x598] sm:$0xff] }
 0x1ba   : > { %v2306_v43 = vpack.c.bf16 %v772_v39, %v770_v38  ;;  %v439_v38 = vld [vmem:[#allocation8 + $0x1d8] sm:$0xff] }
 0x1bc   : > { %2285 = vmatpush1.bf16.msra.mxu0 %v2284_v48  ;;  %v774_v48 = vld [vmem:[#allocation5 + $0x5a8] sm:$0xff] }
 0x1bd   : > { %2287 = vmatprep.subr.bf16.mxu0 %v2286_v50  ;;  %v776_v50 = vld [vmem:[#allocation5 + $0x5b8] sm:$0xff] }
 0x1be   : > { %v2310_v54 = vpack.c.bf16 %v776_v50, %v774_v48  ;;  %v443_v48 = vld [vmem:[#allocation8 + $0x1f8] sm:$0xff] }
 0x1bf   : > { %v3455_v50 = vpack.c.bf16 %v443_v48, %v441_v46 }
 0x1c0   : > { %2289 = vmatpush1.bf16.msra.mxu0 %v2288_v59  ;;  %v778_v59 = vld [vmem:[#allocation5 + $0x5c8] sm:$0xff] }
 0x1c1   : > { %2291 = vmatprep.subr.bf16.mxu0 %v2290_v61  ;;  %v780_v61 = vld [vmem:[#allocation5 + $0x5d8] sm:$0xff] }
 0x1c2   : > { %v2314_v5 = vpack.c.bf16 %v780_v61, %v778_v59 }
 0x1c4   : > { %2293 = vmatpush1.bf16.msra.mxu0 %v2292_v14  ;;  %v782_v14 = vld [vmem:[#allocation5 + $0x5e8] sm:$0xff] }
 0x1c5   : > { %2295 = vmatprep.subr.bf16.mxu0 %v2294_v15  ;;  %v784_v15 = vld [vmem:[#allocation5 + $0x5f8] sm:$0xff] }
 0x1c6   : > { %v2318_v17 = vpack.c.bf16 %v784_v15, %v782_v14 }
 0x1c8   : > { %2297 = vmatpush1.bf16.msra.mxu0 %v2296_v22  ;;  %v2320_v22 = vpack.c.bf16 %v783_v21, %v781_v7 }
 0x1c9   : > { %2299 = vmatprep.subr.bf16.mxu0 %v2298_v62  ;;  %v428_v62 = vld [vmem:[#allocation8 + $0x180] sm:$0xff] }
 0x1ca   : > { %v3440_v26 = vpack.c.bf16 %v430_v25, %v428_v62  ;;  %v3494_v62 = vsub.s32 0, %v3332_v2 }
 0x1cc   : > { %2301 = vmatpush1.bf16.msra.mxu0 %v2300_v31  ;;  %2373 = vmatpush1.bf16.msra.mxu1 %v3440_v26  ;;  %v3443_v31 = vpack.c.bf16 %v435_v30, %v433_v29 }
 0x1cd   : > { %2303 = vmatprep.subr.bf16.mxu0 %v2302_v32  ;;  %v432_v32 = vld [vmem:[#allocation8 + $0x1a0] sm:$0xff] }
 0x1ce   : > { %v3445_v35 = vpack.c.bf16 %v434_v34, %v432_v32  ;;  %2375 = vmatprep.subr.bf16.mxu1 %v3443_v31 }
 0x1d0   : > { %2305 = vmatpush1.bf16.msra.mxu0 %v2304_v42  ;;  %2377 = vmatpush1.bf16.msra.mxu1 %v3445_v35  ;;  %v436_v42 = vld [vmem:[#allocation8 + $0x1c0] sm:$0xff] }
 0x1d1   : > { %2307 = vmatprep.subr.bf16.mxu0 %v2306_v43  ;;  %v438_v43 = vld [vmem:[#allocation8 + $0x1d0] sm:$0xff] }
 0x1d2   : > { %v3451_v45 = vpack.c.bf16 %v438_v43, %v436_v42 }
 0x1d4   : > { %2309 = vmatpush1.bf16.msra.mxu0 %v2308_v53  ;;  %v440_v53 = vld [vmem:[#allocation8 + $0x1e0] sm:$0xff] }
 0x1d5   : > { %2311 = vmatprep.subr.bf16.mxu0 %v2310_v54  ;;  %v442_v54 = vld [vmem:[#allocation8 + $0x1f0] sm:$0xff] }
 0x1d6   : > { %v3457_v55 = vpack.c.bf16 %v442_v54, %v440_v53 }
 0x1d8   : > { %2313 = vmatpush1.bf16.msra.mxu0 %v2312_v3 }
 0x1d9   : > { %2315 = vmatprep.subr.bf16.mxu0 %v2314_v5 }
 0x1dc   : > { %2317 = vmatpush1.bf16.msra.mxu0 %v2316_v16 }
 0x1dd   : > { %2319 = vmatprep.subr.bf16.mxu0 %v2318_v17 }
 0x1e0   : > { %2321 = vmatpush1.bf16.msra.mxu0 %v2320_v22 }
 0x1e3   : > { %992 = vmatmul.mubr.f32.vlgmr.msra.gmra.mrb[2].mxu0 %v3356_v57  ;;  %v437_v57 = vld [vmem:[#allocation8 + $0x1c8] sm:$0xff] }
 0x1e4   : > { %1282 = vmatprep.mubr.f32.mxu0 %v3064_v1  ;;  %v3449_v39 = vpack.c.bf16 %v439_v38, %v437_v57 }
 0x1e6   : > { %2379 = vmatprep.subr.bf16.mxu1 %v3449_v39 }
 0x1e7   : > { %2381 = vmatpush1.bf16.msra.mxu1 %v3451_v45 }
 0x1e8   : > { %2383 = vmatprep.subr.bf16.mxu1 %v3455_v50 }
 0x1eb   : > { %2385 = vmatpush1.bf16.msra.mxu1 %v3457_v55 }
 0x1ec   : > { %2387 = vmatprep.subr.bf16.mxu1 %v3361_v13 }
 0x2b6   : > { %v993_v56 = vpop.f32.mrb[2].mxu0 }
 0x2b7   : > { %v998_v59 = vrot.slane %v993_v56, 4  ;;  %v995_v61 = vpop.f32.mrb[3].mxu0 }
 0x2b8   : > { %v1004_v3 = vrot.slane %v995_v61, 4 }
 0x2b9   : > { %v999_v5 = vadd.f32 %v998_v59, %v993_v56 }
 0x2ba   : > { %v1005_v11 = vadd.f32 %v1004_v3, %v995_v61 }
 0x2bb   : > { %v1000_v12 = vrot.slane %v999_v5, 2 }
 0x2bc   : > { %v1006_v14 = vrot.slane %v1005_v11, 2 }
 0x2bd   : > { %v1001_v15 = vadd.f32 %v1000_v12, %v999_v5 }
 0x2be   : > { %v1007_v16 = vadd.f32 %v1006_v14, %v1005_v11 }
 0x2bf   : > { %v1002_v17 = vrot.slane %v1001_v15, 1 }
 0x2c0   : > { %v1008_v7 = vrot.slane %v1007_v16, 1 }
 0x2c1   : > { %v1003_v22 = vadd.f32 %v1002_v17, %v1001_v15 }
 0x2c2   : > { %v1009_v21 = vadd.f32 %v1008_v7, %v1007_v16  ;;  %v1188_v7 = vld [vmem:[%s3667_s3] sm:$0x3] }
 0x2c4   : > { %1074 = vmatprep.mubr.f32.mxu1 %v1009_v21  ;;  %v3503_v21 = vsub.s32 1, %v3332_v2 }
 0x2c5   : > { %1075 = vmatmul.mubr.f32.vlgmr.msra.gmra.mrb[2].mxu1 %v1003_v22 }
 0x2c6   : > { %2389 = vmatpush1.bf16.msra.mxu1 %v3363_v18 }
 0x2c7   : > { %2391 = vmatprep.subr.bf16.mxu1 %v3365_v19 }
 0x2ca   : > { %2393 = vmatpush1.bf16.msra.mxu1 %v3369_v6 }
 0x2cb   : > { %2395 = vmatprep.subr.bf16.mxu1 %v3372_v28 }
 0x2ce   : > { %2397 = vmatpush1.bf16.msra.mxu1 %v3375_v37 }
 0x2cf   : > { %2399 = vmatprep.subr.bf16.mxu1 %v3378_v40 }
 0x2d2   : > { %2401 = vmatpush1.bf16.msra.mxu1 %v3381_v49 }
 0x2d3   : > { %2403 = vmatprep.subr.bf16.mxu1 %v3384_v52 }
 0x2d6   : > { %2405 = vmatpush1.bf16.msra.mxu1 %v3387_v63 }
 0x2d7   : > { %2407 = vmatprep.subr.bf16.mxu1 %v3390_v4 }
 0x2da   : > { %2409 = vmatpush1.bf16.msra.mxu1 %v3393_v20 }
 0x2db   : > { %2411 = vmatprep.subr.bf16.mxu1 %v3396_v23 }
 0x2de   : > { %2413 = vmatpush1.bf16.msra.mxu1 %v3399_v33 }
 0x2df   : > { %2415 = vmatprep.subr.bf16.mxu1 %v3402_v36 }
 0x2e2   : > { %2417 = vmatpush1.bf16.msra.mxu1 %v3405_v47 }
 0x2e3   : > { %2419 = vmatprep.subr.bf16.mxu1 %v3408_v51 }
 0x2e6   : > { %2421 = vmatpush1.bf16.msra.mxu1 %v3411_v0 }
 0x2e7   : > { %2423 = vmatprep.subr.bf16.mxu1 %v3414_v10 }
 0x2ea   : > { %2425 = vmatpush1.bf16.msra.mxu1 %v3417_v24 }
 0x2eb   : > { %2427 = vmatprep.subr.bf16.mxu1 %v3420_v27 }
 0x2ee   : > { %2429 = vmatpush1.bf16.msra.mxu1 %v3423_v41 }
 0x2ef   : > { %2431 = vmatprep.subr.bf16.mxu1 %v3426_v44 }
 0x2f2   : > { %2433 = vmatpush1.bf16.msra.mxu1 %v3429_v58 }
 0x2f3   : > { %2435 = vmatprep.subr.bf16.mxu1 %v3432_v60 }
 0x2f6   : > { %2437 = vmatpush1.bf16.msra.mxu1 %v3440_v26 }
 0x2f7   : > { %2439 = vmatprep.subr.bf16.mxu1 %v3443_v31 }
 0x2fa   : > { %2441 = vmatpush1.bf16.msra.mxu1 %v3445_v35 }
 0x2fb   : > { %2443 = vmatprep.subr.bf16.mxu1 %v3449_v39 }
 0x2fe   : > { %2445 = vmatpush1.bf16.msra.mxu1 %v3451_v45 }
 0x2ff   : > { %2447 = vmatprep.subr.bf16.mxu1 %v3455_v50 }
 0x302   : > { %2449 = vmatpush1.bf16.msra.mxu1 %v3457_v55 }
 0x398   : > { %v1076_v25 = vpop.f32.mrb[2].mxu1 }
 0x399   : > { %v1084_v29 = vrot.slane %v1076_v25, %v3494_v62  ;;  %v1078_v30 = vpop.f32.mrb[3].mxu1  ;;  %v1202_v25 = vld [vmem:[%s3668_s4] sm:$0x3] }
 0x39a   : > { %v1088_v32 = vrot.slane %v1078_v30, %v3494_v62  ;;  %v1193_v30 = vrot.slane %v1188_v7, %v3494_v62  ;;  %v1211_v2 = vrot.slane %v1202_v25, %v3503_v21 }
 0x39b   : > { %v1089_v34 = vsub.f32 %v993_v56, %v1084_v29 }
 0x39c   : > { %v1090_v57 = vsub.f32 %v995_v61, %v1088_v32 }
 0x39d   : > { %v1091_v38 = vmul.f32 %v1089_v34, %v1089_v34 }
 0x39e   : > { %v1092_v42 = vmul.f32 %v1090_v57, %v1090_v57 }
 0x39f   : > { %v1093_v43 = vrot.slane %v1091_v38, 4 }
 0x3a0   : > { %v1099_v46 = vrot.slane %v1092_v42, 4 }
 0x3a1   : > { %v1094_v48 = vadd.f32 %v1093_v43, %v1091_v38  ;;  %v1197_v38 = vrot.slane %v1188_v7, %v3503_v21  ;;  %v1366_v7 = vld [vmem:[#allocation7 + $0x30] sm:$0xff] }
 0x3a2   : > { %v1100_v53 = vadd.f32 %v1099_v46, %v1092_v42  ;;  %v1207_v42 = vrot.slane %v1202_v25, %v3494_v62  ;;  %v1371_v25 = vld [vmem:[#allocation7 + $0x58] sm:$0xff] }
 0x3a3   : > { %v1095_v54 = vrot.slane %v1094_v48, 2 }
 0x3a4   : > { %v1101_v59 = vrot.slane %v1100_v53, 2 }
 0x3a5   : > { %v1096_v3 = vadd.f32 %v1095_v54, %v1094_v48 }
 0x3a6   : > { %v1102_v5 = vadd.f32 %v1101_v59, %v1100_v53 }
 0x3a7   : > { %v1097_v11 = vrot.slane %v1096_v3, 1 }
 0x3a8   : > { %v1103_v12 = vrot.slane %v1102_v5, 1 }
 0x3a9   : > { %v1098_v15 = vadd.f32 %v1097_v11, %v1096_v3  ;;  %v1361_v3 = vld [vmem:[#allocation7 + $0x8] sm:$0xff]  ;;  %v1360_v11 = vld [vmem:[#allocation7] sm:$0xff] }
 0x3aa   : > { %v1104_v14 = vadd.f32 %v1103_v12, %v1102_v5  ;;  %v1363_v5 = vld [vmem:[#allocation7 + $0x18] sm:$0xff]  ;;  %v1362_v12 = vld [vmem:[#allocation7 + $0x10] sm:$0xff] }
 0x3ac   : > { %1169 = vmatprep.mubr.f32.mxu1 %v1104_v14 }
 0x3ad   : > { %1170 = vmatmul.mubr.f32.vlgmr.msra.gmra.mrb[4].mxu1 %v1098_v15  ;;  %v1365_v15 = vld [vmem:[#allocation7 + $0x28] sm:$0xff] }
 0x3ae   : > { %1353 = vmatprep.mubr.f32.mxu1 %v3064_v1 }
 0x480   : > { %v1171_v56 = vpop.f32.mrb[4].mxu1 }
 0x481   : > { %v1172_v61 = vadd.f32 1e-05, %v1171_v56  ;;  %v1173_v16 = vpop.f32.mrb[5].mxu1  ;;  %v1367_v56 = vld [vmem:[#allocation7 + $0x38] sm:$0xff] }
 0x482   : > { %v1174_v17 = vadd.f32 1e-05, %v1173_v16  ;;  %v2450_v16 = vpack.c.bf16 %v1363_v5, %v1361_v3  ;;  %v1378_v3 = vld [vmem:[#allocation7 + $0x90] sm:$0xff]  ;;  %v1381_v5 = vld [vmem:[#allocation7 + $0xa8] sm:$0xff] }
 0x483   : > { %2858 = vrsqrt.f32 %v1172_v61 }
 0x484   : > { %2860 = vrsqrt.f32 %v1174_v17  ;;  %v1364_v17 = vld [vmem:[#allocation7 + $0x20] sm:$0xff] }
 0x48d   : > { %v2859_v22 = vpop.eup %2858 }
 0x48e   : > { %v2861_v29 = vpop.eup %2860  ;;  %v1181_v1 = vrot.slane %v2859_v22, %v3494_v62  ;;  %v1369_v22 = vld [vmem:[#allocation7 + $0x48] sm:$0xff] }
 0x48f   : > { %v1185_v32 = vrot.slane %v2861_v29, %v3494_v62  ;;  %v2456_v29 = vpack.c.bf16 %v1366_v7, %v1364_v17 }
 0x490   : > { %v1186_v43 = vmul.f32 %v1181_v1, %v1089_v34  ;;  %v2452_v34 = vpack.c.bf16 %v1362_v12, %v1360_v11  ;;  %v2458_v1 = vpack.c.bf16 %v1371_v25, %v1369_v22  ;;  %v1383_v11 = vld [vmem:[#allocation7 + $0xb8] sm:$0xff]  ;;  %v1384_v22 = vld [vmem:[#allocation7 + $0xc0] sm:$0xff]  ;;  %v1386_v25 = vld [vmem:[#allocation7 + $0xd0] sm:$0xff] }
 0x491   : > { %v1187_v46 = vmul.f32 %v1185_v32, %v1090_v57  ;;  %v2454_v57 = vpack.c.bf16 %v1367_v56, %v1365_v15  ;;  %v1370_v32 = vld [vmem:[#allocation7 + $0x50] sm:$0xff]  ;;  %v2470_v15 = vpack.c.bf16 %v1383_v11, %v1381_v5  ;;  %v1380_v56 = vld [vmem:[#allocation7 + $0xa0] sm:$0xff] }
 0x492   : > { %v1200_v48 = vmul.f32 %v1193_v30, %v1186_v43  ;;  %v1368_v30 = vld [vmem:[#allocation7 + $0x40] sm:$0xff]  ;;  %v1398_v11 = vld [vmem:[#allocation7 + $0x130] sm:$0xff] }
 0x493   : > { %v1201_v53 = vmul.f32 %v1197_v38, %v1187_v46  ;;  %v1373_v38 = vld [vmem:[#allocation7 + $0x68] sm:$0xff]  ;;  %v1372_v43 = vld [vmem:[#allocation7 + $0x60] sm:$0xff]  ;;  %v1374_v46 = vld [vmem:[#allocation7 + $0x70] sm:$0xff] }
 0x494   : > { %v1214_v54 = vadd.f32 %v1207_v42, %v1200_v48  ;;  %v2460_v42 = vpack.c.bf16 %v1370_v32, %v1368_v30  ;;  %v1379_v48 = vld [vmem:[#allocation7 + $0x98] sm:$0xff]  ;;  %v2476_v30 = vpack.c.bf16 %v1386_v25, %v1384_v22  ;;  %v1396_v5 = vld [vmem:[#allocation7 + $0x120] sm:$0xff] }
 0x495   : > { %v1215_v59 = vadd.f32 %v1211_v2, %v1201_v53  ;;  %v1377_v2 = vld [vmem:[#allocation7 + $0x88] sm:$0xff]  ;;  %v2464_v53 = vpack.c.bf16 %v1374_v46, %v1372_v43 }
 0x496   : > { %v3516_v61 = vmax.f32 %v1214_v54, 0.0  ;;  %v2466_v54 = vpack.c.bf16 %v1379_v48, %v1377_v2  ;;  %v1392_v2 = vld [vmem:[#allocation7 + $0x100] sm:$0xff]  ;;  %v1394_v48 = vld [vmem:[#allocation7 + $0x110] sm:$0xff] }
 0x497   : > { %v3514_v14 = vmax.f32 %v1215_v59, 0.0  ;;  %v1376_v59 = vld [vmem:[#allocation7 + $0x80] sm:$0xff] }
 0x498   : > { %v2468_v12 = vpack.c.bf16 %v1378_v3, %v1376_v59  ;;  %v2484_v59 = vpack.c.bf16 %v1394_v48, %v1392_v2 }
 0x499   : > { %1218 = vmatprep.subr.mxu0 %v3514_v14  ;;  %1289 = vmatprep.subr.mxu1 %v3514_v14 }
 0x49a   : > { %1219 = vmatpush1.msra.mxu0 %v3516_v61  ;;  %1290 = vmatpush1.msra.mxu1 %v3516_v61 }
 0x49b   : > { %2121 = vmatmul.mubr.msk.f32.vlgmr.msra.gmra.mrb[4].mxu0 %vm444_vm2, %v3343_v8  ;;  %2122 = vmatmul.mubr.msk.f32.vlgmr.msra.gmra.mrb[6].mxu1 %vm444_vm2, %v3346_v9  ;;  %v1375_v8 = vld [vmem:[#allocation7 + $0x78] sm:$0xff] }
 0x49c   : > { %2451 = vmatprep.subr.bf16.mxu1 %v2450_v16  ;;  %2643 = vmatprep.subr.bf16.mxu0 %v3361_v13  ;;  %v2462_v9 = vpack.c.bf16 %v1375_v8, %v1373_v38  ;;  %v1382_v16 = vld [vmem:[#allocation7 + $0xb0] sm:$0xff]  ;;  %v1388_v38 = vld [vmem:[#allocation7 + $0xe0] sm:$0xff] }
 0x49d   : > { %2453 = vmatpush1.bf16.msra.mxu1 %v2452_v34  ;;  %2645 = vmatpush1.bf16.msra.mxu0 %v3363_v18  ;;  %v1385_v34 = vld [vmem:[#allocation7 + $0xc8] sm:$0xff]  ;;  %v2472_v17 = vpack.c.bf16 %v1382_v16, %v1380_v56  ;;  %v1390_v8 = vld [vmem:[#allocation7 + $0xf0] sm:$0xff]  ;;  %v2488_v56 = vpack.c.bf16 %v1398_v11, %v1396_v5 }
 0x49e   : > { %2455 = vmatprep.subr.bf16.mxu1 %v2454_v57  ;;  %2647 = vmatprep.subr.bf16.mxu0 %v3365_v19  ;;  %v1387_v57 = vld [vmem:[#allocation7 + $0xd8] sm:$0xff]  ;;  %v2480_v43 = vpack.c.bf16 %v1390_v8, %v1388_v38 }
 0x49f   : > { %v2474_v7 = vpack.c.bf16 %v1387_v57, %v1385_v34  ;;  %v1400_v34 = vld [vmem:[#allocation7 + $0x140] sm:$0xff]  ;;  %v1402_v57 = vld [vmem:[#allocation7 + $0x150] sm:$0xff] }
 0x4a0   : > { %v2492_v22 = vpack.c.bf16 %v1402_v57, %v1400_v34 }
 0x4a1   : > { %2457 = vmatpush1.bf16.msra.mxu1 %v2456_v29  ;;  %2649 = vmatpush1.bf16.msra.mxu0 %v3369_v6  ;;  %v1389_v29 = vld [vmem:[#allocation7 + $0xe8] sm:$0xff] }
 0x4a2   : > { %2459 = vmatprep.subr.bf16.mxu1 %v2458_v1  ;;  %2651 = vmatprep.subr.bf16.mxu0 %v3372_v28  ;;  %v1391_v1 = vld [vmem:[#allocation7 + $0xf8] sm:$0xff] }
 0x4a3   : > { %v2478_v32 = vpack.c.bf16 %v1391_v1, %v1389_v29  ;;  %v1404_v29 = vld [vmem:[#allocation7 + $0x160] sm:$0xff]  ;;  %v1406_v1 = vld [vmem:[#allocation7 + $0x170] sm:$0xff] }
 0x4a4   : > { %v2496_v38 = vpack.c.bf16 %v1406_v1, %v1404_v29  ;;  %v1427_v29 = vld [vmem:[#allocation7 + $0x218] sm:$0xff] }
 0x4a5   : > { %2461 = vmatpush1.bf16.msra.mxu1 %v2460_v42  ;;  %2653 = vmatpush1.bf16.msra.mxu0 %v3375_v37  ;;  %v1393_v42 = vld [vmem:[#allocation7 + $0x108] sm:$0xff] }
 0x4a6   : > { %2463 = vmatprep.subr.bf16.mxu1 %v2462_v9  ;;  %2655 = vmatprep.subr.bf16.mxu0 %v3378_v40  ;;  %v1395_v9 = vld [vmem:[#allocation7 + $0x118] sm:$0xff] }
 0x4a7   : > { %v2482_v46 = vpack.c.bf16 %v1395_v9, %v1393_v42  ;;  %v1408_v42 = vld [vmem:[#allocation7 + $0x180] sm:$0xff]  ;;  %v1410_v9 = vld [vmem:[#allocation7 + $0x190] sm:$0xff] }
 0x4a8   : > { %v2500_v2 = vpack.c.bf16 %v1410_v9, %v1408_v42 }
 0x4a9   : > { %2465 = vmatpush1.bf16.msra.mxu1 %v2464_v53  ;;  %2657 = vmatpush1.bf16.msra.mxu0 %v3381_v49  ;;  %v1397_v53 = vld [vmem:[#allocation7 + $0x128] sm:$0xff] }
 0x4aa   : > { %2467 = vmatprep.subr.bf16.mxu1 %v2466_v54  ;;  %2659 = vmatprep.subr.bf16.mxu0 %v3384_v52  ;;  %v1399_v54 = vld [vmem:[#allocation7 + $0x138] sm:$0xff] }
 0x4ab   : > { %v2486_v3 = vpack.c.bf16 %v1399_v54, %v1397_v53  ;;  %v1412_v53 = vld [vmem:[#allocation7 + $0x1a0] sm:$0xff]  ;;  %v1414_v54 = vld [vmem:[#allocation7 + $0x1b0] sm:$0xff] }
 0x4ac   : > { %v2504_v5 = vpack.c.bf16 %v1414_v54, %v1412_v53  ;;  %v1430_v53 = vld [vmem:[#allocation7 + $0x230] sm:$0xff] }
 0x4ad   : > { %2469 = vmatpush1.bf16.msra.mxu1 %v2468_v12  ;;  %2661 = vmatpush1.bf16.msra.mxu0 %v3387_v63  ;;  %v1401_v12 = vld [vmem:[#allocation7 + $0x148] sm:$0xff] }
 0x4ae   : > { %2471 = vmatprep.subr.bf16.mxu1 %v2470_v15  ;;  %2663 = vmatprep.subr.bf16.mxu0 %v3390_v4  ;;  %v1403_v15 = vld [vmem:[#allocation7 + $0x158] sm:$0xff] }
 0x4af   : > { %v2490_v16 = vpack.c.bf16 %v1403_v15, %v1401_v12  ;;  %v1416_v12 = vld [vmem:[#allocation7 + $0x1c0] sm:$0xff]  ;;  %v1418_v15 = vld [vmem:[#allocation7 + $0x1d0] sm:$0xff] }
 0x4b0   : > { %v2508_v34 = vpack.c.bf16 %v1418_v15, %v1416_v12  ;;  %v1434_v12 = vld [vmem:[#allocation7 + $0x250] sm:$0xff]  ;;  %v1437_v15 = vld [vmem:[#allocation7 + $0x268] sm:$0xff] }
 0x4b1   : > { %2473 = vmatpush1.bf16.msra.mxu1 %v2472_v17  ;;  %2665 = vmatpush1.bf16.msra.mxu0 %v3393_v20  ;;  %v1405_v17 = vld [vmem:[#allocation7 + $0x168] sm:$0xff] }
 0x4b2   : > { %2475 = vmatprep.subr.bf16.mxu1 %v2474_v7  ;;  %2667 = vmatprep.subr.bf16.mxu0 %v3396_v23  ;;  %v1407_v7 = vld [vmem:[#allocation7 + $0x178] sm:$0xff] }
 0x4b3   : > { %v2494_v25 = vpack.c.bf16 %v1407_v7, %v1405_v17  ;;  %v1420_v17 = vld [vmem:[#allocation7 + $0x1e0] sm:$0xff]  ;;  %v1422_v7 = vld [vmem:[#allocation7 + $0x1f0] sm:$0xff] }
 0x4b5   : > { %2477 = vmatpush1.bf16.msra.mxu1 %v2476_v30  ;;  %2669 = vmatpush1.bf16.msra.mxu0 %v3399_v33  ;;  %v1409_v30 = vld [vmem:[#allocation7 + $0x188] sm:$0xff] }
 0x4b6   : > { %2479 = vmatprep.subr.bf16.mxu1 %v2478_v32  ;;  %2671 = vmatprep.subr.bf16.mxu0 %v3402_v36  ;;  %v1411_v32 = vld [vmem:[#allocation7 + $0x198] sm:$0xff] }
 0x4b7   : > { %v2498_v8 = vpack.c.bf16 %v1411_v32, %v1409_v30  ;;  %v1424_v30 = vld [vmem:[#allocation7 + $0x200] sm:$0xff]  ;;  %v1426_v32 = vld [vmem:[#allocation7 + $0x210] sm:$0xff] }
 0x4b8   : > { %v2516_v9 = vpack.c.bf16 %v1426_v32, %v1424_v30  ;;  %v1445_v30 = vld [vmem:[#allocation7 + $0x2a8] sm:$0xff]  ;;  %v1447_v32 = vld [vmem:[#allocation7 + $0x2b8] sm:$0xff] }
 0x4b9   : > { %2481 = vmatpush1.bf16.msra.mxu1 %v2480_v43  ;;  %2673 = vmatpush1.bf16.msra.mxu0 %v3405_v47  ;;  %v1413_v43 = vld [vmem:[#allocation7 + $0x1a8] sm:$0xff] }
 0x4ba   : > { %2483 = vmatprep.subr.bf16.mxu1 %v2482_v46  ;;  %2675 = vmatprep.subr.bf16.mxu0 %v3408_v51  ;;  %v1415_v46 = vld [vmem:[#allocation7 + $0x1b8] sm:$0xff] }
 0x4bb   : > { %v2502_v48 = vpack.c.bf16 %v1415_v46, %v1413_v43 }
 0x4bd   : > { %2485 = vmatpush1.bf16.msra.mxu1 %v2484_v59  ;;  %2677 = vmatpush1.bf16.msra.mxu0 %v3411_v0  ;;  %v1417_v59 = vld [vmem:[#allocation7 + $0x1c8] sm:$0xff] }
 0x4be   : > { %2487 = vmatprep.subr.bf16.mxu1 %v2486_v3  ;;  %2679 = vmatprep.subr.bf16.mxu0 %v3414_v10  ;;  %v1419_v3 = vld [vmem:[#allocation7 + $0x1d8] sm:$0xff] }
 0x4bf   : > { %v2506_v11 = vpack.c.bf16 %v1419_v3, %v1417_v59  ;;  %v1435_v59 = vld [vmem:[#allocation7 + $0x258] sm:$0xff] }
 0x4c1   : > { %2489 = vmatpush1.bf16.msra.mxu1 %v2488_v56  ;;  %2681 = vmatpush1.bf16.msra.mxu0 %v3417_v24  ;;  %v1421_v56 = vld [vmem:[#allocation7 + $0x1e8] sm:$0xff] }
 0x4c2   : > { %2491 = vmatprep.subr.bf16.mxu1 %v2490_v16  ;;  %2683 = vmatprep.subr.bf16.mxu0 %v3420_v27  ;;  %v1423_v16 = vld [vmem:[#allocation7 + $0x1f8] sm:$0xff] }
 0x4c3   : > { %v2510_v57 = vpack.c.bf16 %v1423_v16, %v1421_v56  ;;  %v1439_v56 = vld [vmem:[#allocation7 + $0x278] sm:$0xff] }
 0x4c5   : > { %2493 = vmatpush1.bf16.msra.mxu1 %v2492_v22  ;;  %2685 = vmatpush1.bf16.msra.mxu0 %v3423_v41  ;;  %v2512_v22 = vpack.c.bf16 %v1422_v7, %v1420_v17  ;;  %v1438_v17 = vld [vmem:[#allocation7 + $0x270] sm:$0xff]  ;;  %v1441_v7 = vld [vmem:[#allocation7 + $0x288] sm:$0xff] }
 0x4c6   : > { %2495 = vmatprep.subr.bf16.mxu1 %v2494_v25  ;;  %2687 = vmatprep.subr.bf16.mxu0 %v3426_v44  ;;  %v1425_v25 = vld [vmem:[#allocation7 + $0x208] sm:$0xff] }
 0x4c7   : > { %v2514_v1 = vpack.c.bf16 %v1427_v29, %v1425_v25 }
 0x4c9   : > { %2497 = vmatpush1.bf16.msra.mxu1 %v2496_v38  ;;  %2689 = vmatpush1.bf16.msra.mxu0 %v3429_v58  ;;  %v1429_v38 = vld [vmem:[#allocation7 + $0x228] sm:$0xff] }
 0x4ca   : > { %2499 = vmatprep.subr.bf16.mxu1 %v2498_v8  ;;  %2691 = vmatprep.subr.bf16.mxu0 %v3432_v60  ;;  %v1431_v8 = vld [vmem:[#allocation7 + $0x238] sm:$0xff] }
 0x4cd   : > { %2501 = vmatpush1.bf16.msra.mxu1 %v2500_v2  ;;  %2693 = vmatpush1.bf16.msra.mxu0 %v3440_v26  ;;  %v2518_v2 = vpack.c.bf16 %v1431_v8, %v1429_v38  ;;  %v2534_v8 = vpack.c.bf16 %v1447_v32, %v1445_v30  ;;  %v1460_v30 = vld [vmem:[#allocation7 + $0x320] sm:$0xff]  ;;  %v1462_v32 = vld [vmem:[#allocation7 + $0x330] sm:$0xff] }
 0x4ce   : > { %2503 = vmatprep.subr.bf16.mxu1 %v2502_v48  ;;  %2695 = vmatprep.subr.bf16.mxu0 %v3443_v31  ;;  %v1428_v48 = vld [vmem:[#allocation7 + $0x220] sm:$0xff] }
 0x4cf   : > { %v2520_v3 = vpack.c.bf16 %v1430_v53, %v1428_v48 }
 0x4d1   : > { %2505 = vmatpush1.bf16.msra.mxu1 %v2504_v5  ;;  %2697 = vmatpush1.bf16.msra.mxu0 %v3445_v35 }
 0x4d2   : > { %2507 = vmatprep.subr.bf16.mxu1 %v2506_v11  ;;  %2699 = vmatprep.subr.bf16.mxu0 %v3449_v39  ;;  %v1432_v11 = vld [vmem:[#allocation7 + $0x240] sm:$0xff] }
 0x4d3   : > { %v2524_v16 = vpack.c.bf16 %v1434_v12, %v1432_v11 }
 0x4d5   : > { %2509 = vmatpush1.bf16.msra.mxu1 %v2508_v34  ;;  %2701 = vmatpush1.bf16.msra.mxu0 %v3451_v45  ;;  %v2526_v34 = vpack.c.bf16 %v1439_v56, %v1437_v15  ;;  %v1452_v15 = vld [vmem:[#allocation7 + $0x2e0] sm:$0xff]  ;;  %v1454_v56 = vld [vmem:[#allocation7 + $0x2f0] sm:$0xff] }
 0x4d6   : > { %2511 = vmatprep.subr.bf16.mxu1 %v2510_v57  ;;  %2703 = vmatprep.subr.bf16.mxu0 %v3455_v50  ;;  %v1436_v57 = vld [vmem:[#allocation7 + $0x260] sm:$0xff] }
 0x4d7   : > { %v2528_v25 = vpack.c.bf16 %v1438_v17, %v1436_v57  ;;  %v2544_v57 = vpack.c.bf16 %v1454_v56, %v1452_v15 }
 0x4d9   : > { %2513 = vmatpush1.bf16.msra.mxu1 %v2512_v22  ;;  %2705 = vmatpush1.bf16.msra.mxu0 %v3457_v55  ;;  %v1443_v22 = vld [vmem:[#allocation7 + $0x298] sm:$0xff] }
 0x4da   : > { %2707 = vmatprep.subr.bf16.mxu0 %v3361_v13  ;;  %2515 = vmatprep.subr.bf16.mxu1 %v2514_v1  ;;  %v1433_v13 = vld [vmem:[#allocation7 + $0x248] sm:$0xff]  ;;  %v2530_v29 = vpack.c.bf16 %v1443_v22, %v1441_v7  ;;  %v1442_v1 = vld [vmem:[#allocation7 + $0x290] sm:$0xff]  ;;  %v1456_v7 = vld [vmem:[#allocation7 + $0x300] sm:$0xff] }
 0x4db   : > { %v2522_v5 = vpack.c.bf16 %v1435_v59, %v1433_v13  ;;  %v1448_v13 = vld [vmem:[#allocation7 + $0x2c0] sm:$0xff]  ;;  %v1450_v59 = vld [vmem:[#allocation7 + $0x2d0] sm:$0xff] }
 0x4dc   : > { %v2540_v11 = vpack.c.bf16 %v1450_v59, %v1448_v13  ;;  %v1458_v22 = vld [vmem:[#allocation7 + $0x310] sm:$0xff] }
 0x56e   : > { %v1284_v42 = vpop.f32.mrb[4].mxu0  ;;  %v3559_v43 = vpop.f32.mrb[6].mxu1 }
 0x56f   : > { %v1286_v46 = vpop.f32.mrb[5].mxu0  ;;  %v3561_v54 = vpop.f32.mrb[7].mxu1 }
 0x570   : > { %1616 = vmatprep.mubr.f32.mxu1 %v1286_v46  ;;  %v1449_v46 = vld [vmem:[#allocation7 + $0x2c8] sm:$0xff] }
 0x571   : > { %1617 = vmatmul.mubr.f32.vlgmr.msra.gmra.mrb[8].mxu1 %v1284_v42  ;;  %v1444_v42 = vld [vmem:[#allocation7 + $0x2a0] sm:$0xff] }
 0x572   : > { %2517 = vmatpush1.bf16.msra.mxu1 %v2516_v9  ;;  %1687 = vmatprep.mubr.f32.mxu1 %v3514_v14  ;;  %v1440_v14 = vld [vmem:[#allocation7 + $0x280] sm:$0xff]  ;;  %v1446_v9 = vld [vmem:[#allocation7 + $0x2b0] sm:$0xff] }
 0x573   : > { %2519 = vmatprep.subr.bf16.mxu1 %v2518_v2  ;;  %v2532_v38 = vpack.c.bf16 %v1442_v1, %v1440_v14  ;;  %v1451_v2 = vld [vmem:[#allocation7 + $0x2d8] sm:$0xff]  ;;  %v2536_v48 = vpack.c.bf16 %v1446_v9, %v1444_v42  ;;  %v2548_v14 = vpack.c.bf16 %v1458_v22, %v1456_v7  ;;  %v2552_v42 = vpack.c.bf16 %v1462_v32, %v1460_v30 }
 0x574   : > { %v2538_v53 = vpack.c.bf16 %v1451_v2, %v1449_v46  ;;  %v1464_v46 = vld [vmem:[#allocation7 + $0x340] sm:$0xff]  ;;  %v1466_v2 = vld [vmem:[#allocation7 + $0x350] sm:$0xff] }
 0x575   : > { %v2556_v13 = vpack.c.bf16 %v1466_v2, %v1464_v46 }
 0x576   : > { %2521 = vmatpush1.bf16.msra.mxu1 %v2520_v3  ;;  %v1453_v3 = vld [vmem:[#allocation7 + $0x2e8] sm:$0xff] }
 0x577   : > { %2523 = vmatprep.subr.bf16.mxu1 %v2522_v5  ;;  %v1455_v5 = vld [vmem:[#allocation7 + $0x2f8] sm:$0xff] }
 0x578   : > { %v2542_v12 = vpack.c.bf16 %v1455_v5, %v1453_v3  ;;  %v1468_v3 = vld [vmem:[#allocation7 + $0x360] sm:$0xff]  ;;  %v1470_v5 = vld [vmem:[#allocation7 + $0x370] sm:$0xff] }
 0x579   : > { %v2560_v15 = vpack.c.bf16 %v1470_v5, %v1468_v3 }
 0x57a   : > { %2525 = vmatpush1.bf16.msra.mxu1 %v2524_v16  ;;  %v1457_v16 = vld [vmem:[#allocation7 + $0x308] sm:$0xff] }
 0x57b   : > { %2527 = vmatprep.subr.bf16.mxu1 %v2526_v34  ;;  %v1459_v34 = vld [vmem:[#allocation7 + $0x318] sm:$0xff] }
 0x57c   : > { %v2546_v17 = vpack.c.bf16 %v1459_v34, %v1457_v16  ;;  %v1472_v16 = vld [vmem:[#allocation7 + $0x380] sm:$0xff]  ;;  %v1474_v34 = vld [vmem:[#allocation7 + $0x390] sm:$0xff] }
 0x57d   : > { %v2564_v7 = vpack.c.bf16 %v1474_v34, %v1472_v16 }
 0x57e   : > { %2529 = vmatpush1.bf16.msra.mxu1 %v2528_v25  ;;  %v1461_v25 = vld [vmem:[#allocation7 + $0x328] sm:$0xff] }
 0x57f   : > { %2531 = vmatprep.subr.bf16.mxu1 %v2530_v29  ;;  %v1463_v29 = vld [vmem:[#allocation7 + $0x338] sm:$0xff] }
 0x580   : > { %v2550_v1 = vpack.c.bf16 %v1463_v29, %v1461_v25  ;;  %v1476_v25 = vld [vmem:[#allocation7 + $0x3a0] sm:$0xff]  ;;  %v1478_v29 = vld [vmem:[#allocation7 + $0x3b0] sm:$0xff] }
 0x581   : > { %v2568_v30 = vpack.c.bf16 %v1478_v29, %v1476_v25 }
 0x582   : > { %2533 = vmatpush1.bf16.msra.mxu1 %v2532_v38  ;;  %v1465_v38 = vld [vmem:[#allocation7 + $0x348] sm:$0xff] }
 0x583   : > { %2535 = vmatprep.subr.bf16.mxu1 %v2534_v8  ;;  %v1467_v8 = vld [vmem:[#allocation7 + $0x358] sm:$0xff] }
 0x584   : > { %v2554_v9 = vpack.c.bf16 %v1467_v8, %v1465_v38  ;;  %v1480_v38 = vld [vmem:[#allocation7 + $0x3c0] sm:$0xff]  ;;  %v1482_v8 = vld [vmem:[#allocation7 + $0x3d0] sm:$0xff] }
 0x585   : > { %v2572_v46 = vpack.c.bf16 %v1482_v8, %v1480_v38 }
 0x586   : > { %2537 = vmatpush1.bf16.msra.mxu1 %v2536_v48  ;;  %v1469_v48 = vld [vmem:[#allocation7 + $0x368] sm:$0xff] }
 0x587   : > { %2539 = vmatprep.subr.bf16.mxu1 %v2538_v53  ;;  %v1471_v53 = vld [vmem:[#allocation7 + $0x378] sm:$0xff] }
 0x588   : > { %v2558_v59 = vpack.c.bf16 %v1471_v53, %v1469_v48  ;;  %v1484_v48 = vld [vmem:[#allocation7 + $0x3e0] sm:$0xff]  ;;  %v1486_v53 = vld [vmem:[#allocation7 + $0x3f0] sm:$0xff] }
 0x589   : > { %v2576_v3 = vpack.c.bf16 %v1486_v53, %v1484_v48  ;;  %v1504_v53 = vld [vmem:[#allocation7 + $0x480] sm:$0xff] }
 0x58a   : > { %2541 = vmatpush1.bf16.msra.mxu1 %v2540_v11  ;;  %v1473_v11 = vld [vmem:[#allocation7 + $0x388] sm:$0xff] }
 0x58b   : > { %2543 = vmatprep.subr.bf16.mxu1 %v2542_v12  ;;  %v1475_v12 = vld [vmem:[#allocation7 + $0x398] sm:$0xff] }
 0x58c   : > { %v2562_v56 = vpack.c.bf16 %v1475_v12, %v1473_v11  ;;  %v1488_v11 = vld [vmem:[#allocation7 + $0x400] sm:$0xff]  ;;  %v1490_v12 = vld [vmem:[#allocation7 + $0x410] sm:$0xff] }
 0x58d   : > { %v2580_v16 = vpack.c.bf16 %v1490_v12, %v1488_v11  ;;  %v1508_v11 = vld [vmem:[#allocation7 + $0x4a0] sm:$0xff]  ;;  %v1510_v12 = vld [vmem:[#allocation7 + $0x4b0] sm:$0xff] }
 0x58e   : > { %2545 = vmatpush1.bf16.msra.mxu1 %v2544_v57  ;;  %v1477_v57 = vld [vmem:[#allocation7 + $0x3a8] sm:$0xff] }
 0x58f   : > { %2547 = vmatprep.subr.bf16.mxu1 %v2546_v17  ;;  %v1479_v17 = vld [vmem:[#allocation7 + $0x3b8] sm:$0xff] }
 0x590   : > { %v2566_v22 = vpack.c.bf16 %v1479_v17, %v1477_v57  ;;  %v1492_v57 = vld [vmem:[#allocation7 + $0x420] sm:$0xff]  ;;  %v1494_v17 = vld [vmem:[#allocation7 + $0x430] sm:$0xff] }
 0x591   : > { %v2584_v25 = vpack.c.bf16 %v1494_v17, %v1492_v57  ;;  %v1512_v57 = vld [vmem:[#allocation7 + $0x4c0] sm:$0xff]  ;;  %v1514_v17 = vld [vmem:[#allocation7 + $0x4d0] sm:$0xff] }
 0x592   : > { %2549 = vmatpush1.bf16.msra.mxu1 %v2548_v14  ;;  %v1481_v14 = vld [vmem:[#allocation7 + $0x3c8] sm:$0xff] }
 0x593   : > { %2551 = vmatprep.subr.bf16.mxu1 %v2550_v1  ;;  %v1483_v1 = vld [vmem:[#allocation7 + $0x3d8] sm:$0xff] }
 0x594   : > { %v2570_v32 = vpack.c.bf16 %v1483_v1, %v1481_v14  ;;  %v1496_v14 = vld [vmem:[#allocation7 + $0x440] sm:$0xff]  ;;  %v1498_v1 = vld [vmem:[#allocation7 + $0x450] sm:$0xff] }
 0x595   : > { %v2588_v38 = vpack.c.bf16 %v1498_v1, %v1496_v14  ;;  %v1516_v14 = vld [vmem:[#allocation7 + $0x4e0] sm:$0xff]  ;;  %v1518_v1 = vld [vmem:[#allocation7 + $0x4f0] sm:$0xff] }
 0x596   : > { %2553 = vmatpush1.bf16.msra.mxu1 %v2552_v42  ;;  %v1485_v42 = vld [vmem:[#allocation7 + $0x3e8] sm:$0xff] }
 0x597   : > { %2555 = vmatprep.subr.bf16.mxu1 %v2554_v9  ;;  %v1487_v9 = vld [vmem:[#allocation7 + $0x3f8] sm:$0xff] }
 0x598   : > { %v2574_v2 = vpack.c.bf16 %v1487_v9, %v1485_v42  ;;  %v1500_v42 = vld [vmem:[#allocation7 + $0x460] sm:$0xff]  ;;  %v1502_v9 = vld [vmem:[#allocation7 + $0x470] sm:$0xff] }
 0x59a   : > { %2557 = vmatpush1.bf16.msra.mxu1 %v2556_v13  ;;  %v1489_v13 = vld [vmem:[#allocation7 + $0x408] sm:$0xff] }
 0x59b   : > { %2559 = vmatprep.subr.bf16.mxu1 %v2558_v59  ;;  %v1491_v59 = vld [vmem:[#allocation7 + $0x418] sm:$0xff] }
 0x59c   : > { %v2578_v5 = vpack.c.bf16 %v1491_v59, %v1489_v13  ;;  %v1509_v13 = vld [vmem:[#allocation7 + $0x4a8] sm:$0xff]  ;;  %v1511_v59 = vld [vmem:[#allocation7 + $0x4b8] sm:$0xff] }
 0x59e   : > { %2561 = vmatpush1.bf16.msra.mxu1 %v2560_v15  ;;  %v1493_v15 = vld [vmem:[#allocation7 + $0x428] sm:$0xff] }
 0x59f   : > { %2563 = vmatprep.subr.bf16.mxu1 %v2562_v56  ;;  %v1495_v56 = vld [vmem:[#allocation7 + $0x438] sm:$0xff] }
 0x5a0   : > { %v2582_v34 = vpack.c.bf16 %v1495_v56, %v1493_v15  ;;  %v1513_v15 = vld [vmem:[#allocation7 + $0x4c8] sm:$0xff]  ;;  %v1515_v56 = vld [vmem:[#allocation7 + $0x4d8] sm:$0xff] }
 0x5a2   : > { %2565 = vmatpush1.bf16.msra.mxu1 %v2564_v7  ;;  %v1497_v7 = vld [vmem:[#allocation7 + $0x448] sm:$0xff] }
 0x5a3   : > { %2567 = vmatprep.subr.bf16.mxu1 %v2566_v22  ;;  %v1499_v22 = vld [vmem:[#allocation7 + $0x458] sm:$0xff] }
 0x5a4   : > { %v2586_v29 = vpack.c.bf16 %v1499_v22, %v1497_v7  ;;  %v1517_v7 = vld [vmem:[#allocation7 + $0x4e8] sm:$0xff]  ;;  %v1519_v22 = vld [vmem:[#allocation7 + $0x4f8] sm:$0xff] }
 0x5a6   : > { %2569 = vmatpush1.bf16.msra.mxu1 %v2568_v30  ;;  %v1501_v30 = vld [vmem:[#allocation7 + $0x468] sm:$0xff] }
 0x5a7   : > { %2571 = vmatprep.subr.bf16.mxu1 %v2570_v32  ;;  %v1503_v32 = vld [vmem:[#allocation7 + $0x478] sm:$0xff] }
 0x5a8   : > { %v2590_v8 = vpack.c.bf16 %v1503_v32, %v1501_v30  ;;  %v1521_v30 = vld [vmem:[#allocation7 + $0x508] sm:$0xff]  ;;  %v1523_v32 = vld [vmem:[#allocation7 + $0x518] sm:$0xff] }
 0x5aa   : > { %2573 = vmatpush1.bf16.msra.mxu1 %v2572_v46  ;;  %v1505_v46 = vld [vmem:[#allocation7 + $0x488] sm:$0xff] }
 0x5ab   : > { %2575 = vmatprep.subr.bf16.mxu1 %v2574_v2  ;;  %v1507_v2 = vld [vmem:[#allocation7 + $0x498] sm:$0xff] }
 0x5ac   : > { %v2594_v48 = vpack.c.bf16 %v1507_v2, %v1505_v46  ;;  %v1525_v46 = vld [vmem:[#allocation7 + $0x528] sm:$0xff]  ;;  %v1527_v2 = vld [vmem:[#allocation7 + $0x538] sm:$0xff] }
 0x5ae   : > { %2577 = vmatpush1.bf16.msra.mxu1 %v2576_v3 }
 0x5af   : > { %2579 = vmatprep.subr.bf16.mxu1 %v2578_v5  ;;  %v2598_v5 = vpack.c.bf16 %v1511_v59, %v1509_v13  ;;  %v1529_v13 = vld [vmem:[#allocation7 + $0x548] sm:$0xff]  ;;  %v1531_v59 = vld [vmem:[#allocation7 + $0x558] sm:$0xff] }
 0x5b1   : > { %1688 = vmatmul.mubr.f32.vlgmr.msra.gmra.mrb[8].mxu1 %v3516_v61  ;;  %v2592_v61 = vpack.c.bf16 %v1502_v9, %v1500_v42  ;;  %v1520_v42 = vld [vmem:[#allocation7 + $0x500] sm:$0xff]  ;;  %v1522_v9 = vld [vmem:[#allocation7 + $0x510] sm:$0xff] }
 0x5b2   : > { %2581 = vmatpush1.bf16.msra.mxu1 %v2580_v16  ;;  %1758 = vmatprep.mubr.f32.mxu1 %v3561_v54  ;;  %v1506_v54 = vld [vmem:[#allocation7 + $0x490] sm:$0xff]  ;;  %v2600_v16 = vpack.c.bf16 %v1510_v12, %v1508_v11  ;;  %v1528_v11 = vld [vmem:[#allocation7 + $0x540] sm:$0xff] }
 0x5b3   : > { %2583 = vmatprep.subr.bf16.mxu1 %v2582_v34  ;;  %v2596_v3 = vpack.c.bf16 %v1506_v54, %v1504_v53  ;;  %v2602_v34 = vpack.c.bf16 %v1515_v56, %v1513_v15  ;;  %v1524_v53 = vld [vmem:[#allocation7 + $0x520] sm:$0xff]  ;;  %v1526_v54 = vld [vmem:[#allocation7 + $0x530] sm:$0xff]  ;;  %v1533_v15 = vld [vmem:[#allocation7 + $0x568] sm:$0xff] }
 0x5b4   : > { %v1530_v12 = vld [vmem:[#allocation7 + $0x550] sm:$0xff]  ;;  %v1535_v56 = vld [vmem:[#allocation7 + $0x578] sm:$0xff] }
 0x5b6   : > { %2585 = vmatpush1.bf16.msra.mxu1 %v2584_v25  ;;  %v2604_v25 = vpack.c.bf16 %v1514_v17, %v1512_v57  ;;  %v1532_v57 = vld [vmem:[#allocation7 + $0x560] sm:$0xff]  ;;  %v1534_v17 = vld [vmem:[#allocation7 + $0x570] sm:$0xff] }
 0x5b7   : > { %2587 = vmatprep.subr.bf16.mxu1 %v2586_v29  ;;  %v2606_v29 = vpack.c.bf16 %v1519_v22, %v1517_v7  ;;  %v1537_v7 = vld [vmem:[#allocation7 + $0x588] sm:$0xff]  ;;  %v1539_v22 = vld [vmem:[#allocation7 + $0x598] sm:$0xff] }
 0x5ba   : > { %2589 = vmatpush1.bf16.msra.mxu1 %v2588_v38  ;;  %v2608_v38 = vpack.c.bf16 %v1518_v1, %v1516_v14  ;;  %v1536_v14 = vld [vmem:[#allocation7 + $0x580] sm:$0xff]  ;;  %v1538_v1 = vld [vmem:[#allocation7 + $0x590] sm:$0xff] }
 0x5bb   : > { %2591 = vmatprep.subr.bf16.mxu1 %v2590_v8  ;;  %v2610_v8 = vpack.c.bf16 %v1523_v32, %v1521_v30  ;;  %v1541_v30 = vld [vmem:[#allocation7 + $0x5a8] sm:$0xff]  ;;  %v1543_v32 = vld [vmem:[#allocation7 + $0x5b8] sm:$0xff] }
 0x5be   : > { %2593 = vmatpush1.bf16.msra.mxu1 %v2592_v61  ;;  %v2612_v61 = vpack.c.bf16 %v1522_v9, %v1520_v42  ;;  %v1540_v42 = vld [vmem:[#allocation7 + $0x5a0] sm:$0xff]  ;;  %v1542_v9 = vld [vmem:[#allocation7 + $0x5b0] sm:$0xff] }
 0x5bf   : > { %2595 = vmatprep.subr.bf16.mxu1 %v2594_v48  ;;  %v2614_v48 = vpack.c.bf16 %v1527_v2, %v1525_v46  ;;  %v1545_v46 = vld [vmem:[#allocation7 + $0x5c8] sm:$0xff]  ;;  %v1547_v2 = vld [vmem:[#allocation7 + $0x5d8] sm:$0xff] }
 0x5c2   : > { %2597 = vmatpush1.bf16.msra.mxu1 %v2596_v3  ;;  %v2616_v3 = vpack.c.bf16 %v1526_v54, %v1524_v53  ;;  %v1544_v53 = vld [vmem:[#allocation7 + $0x5c0] sm:$0xff]  ;;  %v1546_v54 = vld [vmem:[#allocation7 + $0x5d0] sm:$0xff] }
 0x5c3   : > { %2599 = vmatprep.subr.bf16.mxu1 %v2598_v5  ;;  %v2618_v5 = vpack.c.bf16 %v1531_v59, %v1529_v13  ;;  %v1549_v13 = vld [vmem:[#allocation7 + $0x5e8] sm:$0xff]  ;;  %v1551_v59 = vld [vmem:[#allocation7 + $0x5f8] sm:$0xff] }
 0x5c6   : > { %2601 = vmatpush1.bf16.msra.mxu1 %v2600_v16  ;;  %v2620_v16 = vpack.c.bf16 %v1530_v12, %v1528_v11  ;;  %v1548_v11 = vld [vmem:[#allocation7 + $0x5e0] sm:$0xff]  ;;  %v1550_v12 = vld [vmem:[#allocation7 + $0x5f0] sm:$0xff] }
 0x5c7   : > { %2603 = vmatprep.subr.bf16.mxu1 %v2602_v34  ;;  %v2622_v34 = vpack.c.bf16 %v1535_v56, %v1533_v15  ;;  %v2640_v15 = vpack.c.bf16 %v1550_v12, %v1548_v11 }
 0x5ca   : > { %2605 = vmatpush1.bf16.msra.mxu1 %v2604_v25  ;;  %v2624_v25 = vpack.c.bf16 %v1534_v17, %v1532_v57 }
 0x5cb   : > { %2607 = vmatprep.subr.bf16.mxu1 %v2606_v29  ;;  %v2626_v29 = vpack.c.bf16 %v1539_v22, %v1537_v7 }
 0x5ce   : > { %2609 = vmatpush1.bf16.msra.mxu1 %v2608_v38  ;;  %v2628_v38 = vpack.c.bf16 %v1538_v1, %v1536_v14 }
 0x5cf   : > { %2611 = vmatprep.subr.bf16.mxu1 %v2610_v8  ;;  %v2630_v8 = vpack.c.bf16 %v1543_v32, %v1541_v30 }
 0x5d2   : > { %2613 = vmatpush1.bf16.msra.mxu1 %v2612_v61  ;;  %v2632_v61 = vpack.c.bf16 %v1542_v9, %v1540_v42 }
 0x5d3   : > { %2615 = vmatprep.subr.bf16.mxu1 %v2614_v48  ;;  %v2634_v48 = vpack.c.bf16 %v1547_v2, %v1545_v46 }
 0x5d6   : > { %2617 = vmatpush1.bf16.msra.mxu1 %v2616_v3  ;;  %v2636_v3 = vpack.c.bf16 %v1546_v54, %v1544_v53  ;;  %v2866_v54 = vld [vmem:[%s3316_s20] sm:$0xff] }
 0x5d7   : > { %2619 = vmatprep.subr.bf16.mxu1 %v2618_v5  ;;  %v2638_v5 = vpack.c.bf16 %v1551_v59, %v1549_v13  ;;  %v2867_v59 = vld [vmem:[%s3316_s20 + $0x8] sm:$0xff]  ;;  %s3065_s20 = smov [#allocation10]  }
 0x5d8   : > { %s2986_s10 = sshll.u32 %s3065_s20, 4  ;;  %s2987_s10 = int_to_ptr.vmem [resolvable:$false] %s2986_s10 }
 0x5d9   : > { %s2988_s17 = scalar_lea.vmem %s2987_s10, 512  ;;  %p2989_p12 = scmp.lt.s32.totalorder %s3622_s16, %s2987_s10 }
 0x5da   : > { %2621 = vmatpush1.bf16.msra.mxu1 %v2620_v16  ;;  %p2990_p1 = scmp.lt.s32.totalorder %s2988_s17, %s2982_s12 }
 0x5db   : > { %2623 = vmatprep.subr.bf16.mxu1 %v2622_v34 }
 0x5dc   : > { %p2991_p2 = por %p2990_p1, %p2989_p12 }
 0x5de   : > { %2625 = vmatpush1.bf16.msra.mxu1 %v2624_v25  ;;  %p2992_p4 = pnand %p2991_p2, %p2985_p7 }
 0x5df   : > { %2627 = vmatprep.subr.bf16.mxu1 %v2626_v29 }
 0x5e2   : > { %2629 = vmatpush1.bf16.msra.mxu1 %v2628_v38 }
 0x5e3   : > { %2631 = vmatprep.subr.bf16.mxu1 %v2630_v8 }
 0x5e6   : > { %2633 = vmatpush1.bf16.msra.mxu1 %v2632_v61 }
 0x5e7   : > { %2635 = vmatprep.subr.bf16.mxu1 %v2634_v48 }
 0x5ea   : > { %2637 = vmatpush1.bf16.msra.mxu1 %v2636_v3 }
 0x5eb   : > { %2639 = vmatprep.subr.bf16.mxu1 %v2638_v5 }
 0x5ee   : > { %2641 = vmatpush1.bf16.msra.mxu1 %v2640_v15 }
 0x5f1   : > { %1759 = vmatmul.mubr.f32.vlgmr.msra.gmra.mrb[8].mxu1 %v3559_v43 }
 0x6c4   : > { %v1760_v56 = vpop.f32.mrb[8].mxu1 }
 0x6c5   : > { %v1765_v16 = vrot.slane %v1760_v56, 4  ;;  %v1762_v34 = vpop.f32.mrb[9].mxu1 }
 0x6c6   : > { %v1771_v57 = vrot.slane %v1762_v34, 4 }
 0x6c7   : > { %v1766_v17 = vadd.f32 %v1765_v16, %v1760_v56 }
 0x6c8   : > { %v1772_v7 = vadd.f32 %v1771_v57, %v1762_v34 }
 0x6c9   : > { %v1767_v22 = vrot.slane %v1766_v17, 2 }
 0x6ca   : > { %v1773_v25 = vrot.slane %v1772_v7, 2 }
 0x6cb   : > { %v1768_v29 = vadd.f32 %v1767_v22, %v1766_v17 }
 0x6cc   : > { %v1774_v14 = vadd.f32 %v1773_v25, %v1772_v7 }
 0x6cd   : > { %v1769_v1 = vrot.slane %v1768_v29, 1 }
 0x6ce   : > { %v1775_v30 = vrot.slane %v1774_v14, 1 }
 0x6cf   : > { %v1770_v38 = vadd.f32 %v1769_v1, %v1768_v29 }
 0x6d0   : > { %v1776_v32 = vadd.f32 %v1775_v30, %v1774_v14 }
 0x6d2   : > { %1841 = vmatprep.mubr.f32.mxu0 %v1776_v32 }
 0x6d3   : > { %1842 = vmatmul.mubr.f32.vlgmr.msra.gmra.mrb[6].mxu0 %v1770_v38 }
 0x6d4   : > { %2709 = vmatpush1.bf16.msra.mxu0 %v3363_v18 }
 0x6d5   : > { %2711 = vmatprep.subr.bf16.mxu0 %v3365_v19 }
 0x6d8   : > { %2713 = vmatpush1.bf16.msra.mxu0 %v3369_v6 }
 0x6d9   : > { %2715 = vmatprep.subr.bf16.mxu0 %v3372_v28 }
 0x6dc   : > { %2717 = vmatpush1.bf16.msra.mxu0 %v3375_v37 }
 0x6dd   : > { %2719 = vmatprep.subr.bf16.mxu0 %v3378_v40 }
 0x6e0   : > { %2721 = vmatpush1.bf16.msra.mxu0 %v3381_v49 }
 0x6e1   : > { %2723 = vmatprep.subr.bf16.mxu0 %v3384_v52 }
 0x6e4   : > { %2725 = vmatpush1.bf16.msra.mxu0 %v3387_v63 }
 0x6e5   : > { %2727 = vmatprep.subr.bf16.mxu0 %v3390_v4 }
 0x6e8   : > { %2729 = vmatpush1.bf16.msra.mxu0 %v3393_v20 }
 0x6e9   : > { %2731 = vmatprep.subr.bf16.mxu0 %v3396_v23 }
 0x6ec   : > { %2733 = vmatpush1.bf16.msra.mxu0 %v3399_v33 }
 0x6ed   : > { %2735 = vmatprep.subr.bf16.mxu0 %v3402_v36 }
 0x6f0   : > { %2737 = vmatpush1.bf16.msra.mxu0 %v3405_v47 }
 0x6f1   : > { %2739 = vmatprep.subr.bf16.mxu0 %v3408_v51 }
 0x6f4   : > { %2741 = vmatpush1.bf16.msra.mxu0 %v3411_v0 }
 0x6f5   : > { %2743 = vmatprep.subr.bf16.mxu0 %v3414_v10 }
 0x6f8   : > { %2745 = vmatpush1.bf16.msra.mxu0 %v3417_v24 }
 0x6f9   : > { %2747 = vmatprep.subr.bf16.mxu0 %v3420_v27 }
 0x6fc   : > { %2749 = vmatpush1.bf16.msra.mxu0 %v3423_v41 }
 0x6fd   : > { %2751 = vmatprep.subr.bf16.mxu0 %v3426_v44 }
 0x700   : > { %2753 = vmatpush1.bf16.msra.mxu0 %v3429_v58 }
 0x701   : > { %2755 = vmatprep.subr.bf16.mxu0 %v3432_v60 }
 0x704   : > { %2757 = vmatpush1.bf16.msra.mxu0 %v3440_v26  ;;  %v1955_v26 = vld [vmem:[%s3669_s5] sm:$0x3] }
 0x705   : > { %2759 = vmatprep.subr.bf16.mxu0 %v3443_v31  ;;  %v1964_v43 = vrot.slane %v1955_v26, %v3503_v21 }
 0x708   : > { %2761 = vmatpush1.bf16.msra.mxu0 %v3445_v35  ;;  %v1969_v35 = vld [vmem:[%s3670_s6] sm:$0x3] }
 0x709   : > { %2763 = vmatprep.subr.bf16.mxu0 %v3449_v39  ;;  %v1974_v42 = vrot.slane %v1969_v35, %v3494_v62  ;;  %v1978_v46 = vrot.slane %v1969_v35, %v3503_v21 }
 0x70c   : > { %2765 = vmatpush1.bf16.msra.mxu0 %v3451_v45 }
 0x70d   : > { %2767 = vmatprep.subr.bf16.mxu0 %v3455_v50  ;;  %v1960_v50 = vrot.slane %v1955_v26, %v3494_v62 }
 0x710   : > { %2769 = vmatpush1.bf16.msra.mxu0 %v3457_v55 }
 0x7a6   : > { %v1843_v18 = vpop.f32.mrb[6].mxu0 }
 0x7a7   : > { %v1851_v19 = vrot.slane %v1843_v18, %v3494_v62  ;;  %v1845_v6 = vpop.f32.mrb[7].mxu0 }
 0x7a8   : > { %v1855_v28 = vrot.slane %v1845_v6, %v3494_v62 }
 0x7a9   : > { %v1856_v37 = vsub.f32 %v1760_v56, %v1851_v19 }
 0x7aa   : > { %v1857_v40 = vsub.f32 %v1762_v34, %v1855_v28 }
 0x7ab   : > { %v1858_v49 = vmul.f32 %v1856_v37, %v1856_v37 }
 0x7ac   : > { %v1859_v52 = vmul.f32 %v1857_v40, %v1857_v40 }
 0x7ad   : > { %v1860_v63 = vrot.slane %v1858_v49, 4 }
 0x7ae   : > { %v1866_v4 = vrot.slane %v1859_v52, 4 }
 0x7af   : > { %v1861_v20 = vadd.f32 %v1860_v63, %v1858_v49 }
 0x7b0   : > { %v1867_v23 = vadd.f32 %v1866_v4, %v1859_v52 }
 0x7b1   : > { %v1862_v33 = vrot.slane %v1861_v20, 2 }
 0x7b2   : > { %v1868_v36 = vrot.slane %v1867_v23, 2 }
 0x7b3   : > { %v1863_v47 = vadd.f32 %v1862_v33, %v1861_v20 }
 0x7b4   : > { %v1869_v51 = vadd.f32 %v1868_v36, %v1867_v23 }
 0x7b5   : > { %v1864_v0 = vrot.slane %v1863_v47, 1 }
 0x7b6   : > { %v1870_v10 = vrot.slane %v1869_v51, 1 }
 0x7b7   : > { %v1865_v27 = vadd.f32 %v1864_v0, %v1863_v47 }
 0x7b8   : > { %v1871_v24 = vadd.f32 %v1870_v10, %v1869_v51 }
 0x7ba   : > { %1936 = vmatprep.mubr.f32.mxu0 %v1871_v24 }
 0x7bb   : > { %1937 = vmatmul.mubr.f32.vlgmr.msra.gmra.mrb[8].mxu0 %v1865_v27 }
 0x88e   : > { %v1938_v41 = vpop.f32.mrb[8].mxu0 }
 0x88f   : > { %v1939_v44 = vadd.f32 1e-05, %v1938_v41  ;;  %v1940_v58 = vpop.f32.mrb[9].mxu0 }
 0x890   : > { %v1941_v60 = vadd.f32 1e-05, %v1940_v58 }
 0x891   : > { %2862 = vrsqrt.f32 %v1939_v44 }
 0x892   : > { %2864 = vrsqrt.f32 %v1941_v60 }
 0x89b   : > { %v2863_v31 = vpop.eup %2862 }
 0x89c   : > { %v2865_v39 = vpop.eup %2864  ;;  %v1948_v45 = vrot.slane %v2863_v31, %v3494_v62 }
 0x89d   : > { %v1952_v55 = vrot.slane %v2865_v39, %v3494_v62 }
 0x89e   : > { %v1953_v8 = vmul.f32 %v1948_v45, %v1856_v37 }
 0x89f   : > { %v1954_v9 = vmul.f32 %v1952_v55, %v1857_v40 }
 0x8a0   : > { %v1967_v2 = vmul.f32 %v1960_v50, %v1953_v8 }
 0x8a1   : > { %v1968_v61 = vmul.f32 %v1964_v43, %v1954_v9 }
 0x8a2   : > { %v1981_v48 = vadd.f32 %v1974_v42, %v1967_v2 }
 0x8a3   : > { %v1982_v53 = vadd.f32 %v1978_v46, %v1968_v61 }
 0x8a4   : > { %v1983_v13 = vadd.f32 %v2866_v54, %v1981_v48 }
 0x8a5   : > { %v1984_v3 = vadd.f32 %v2867_v59, %v1982_v53 }
 0x8a6   : > { %1985 = vst [vmem:[%s365_s14] sm:$0xff] %v1983_v13 }
 0x8a7   : > { %1986 = vst [vmem:[%s365_s14 + $0x8] sm:$0xff] %v1984_v3 }
 0x8a8   : > { %2995 = shalt.err (!%p2992_p4)
}
 0x8a9   : > { %s2996_s27 = scalar_lea.hbm %s3620_s13, 256  ;;  %s3000_s19 = scalar_lea.hbm %s3672_s8, 512 }
 0x8aa   : > { %p2997_p0 = scmp.ne.s32.totalorder %s3620_s13, %s2996_s27  ;;  %p3001_p8 = scmp.lt.u32.totalorder %s3620_s13, %s3672_s8 }
 0x8ab   : > { %p3002_p13 = scmp.lt.u32.totalorder %s3000_s19, %s2996_s27  ;;  %p3004_p10 = scmp.lt.u32.totalorder %s2996_s27, %s3620_s13 }
 0x8ac   : > { %p2998_p9 = pnand %p2997_p0, %p3265_p5 }
 0x8ad   : > { %p3003_p6 = por %p3002_p13, %p3001_p8 }
 0x8ae   : > { %p2999_p11 = pneg %p2998_p9 }
 0x8af   : > { %p3005_p3 = por %p3004_p10, %p3003_p6 }
 0x8b1   : > { %p3006_p7 = pnand %p3005_p3, %p2999_p11 }
 0x8b3   : > { %3009 = shalt.err (!%p3006_p7)
}
 0x8b4   : > { %2792 = dma.vmem_to_hbm [thread:$0]  (%p3265_p5), %s3622_s16, 256, %s3620_s13, %s1988_s9  }
 0x8b5 PF: > { %s3694_s14 = sld [smem:[#allocation15_spill]]  ;;  %s3695_s25 = sld [smem:[#allocation16_spill]] }
 0x8b6   : > { %p3697_p1 = scmp.ge.s32.totalorder %s3056_s30, 2 }
 0x8bb   : > { %s2014_s11 = sand.u32 1, %s3694_s14   ;;  %p3696_p12 = scmp.ne.s32.totalorder %s3695_s25, 0 }
 0x8bc   : > { %s2015_s12 = scalar_lea.sflag [#allocation4], %s2014_s11 }
 0x8bd   : > { %p2809_p2 = pnand %p3697_p1, %p3696_p12 }
 0x8bf   : > { %3039 = dma.done.wait (!%p2809_p2), %s2015_s12, 256  }
 0x8c0   : > { %3041 = vsyncadd (!%p2809_p2), %s2015_s12, 4294967040  ;;  %p23_p4 = scmp.ge.s32.totalorder %s3251_s26, 4   ;;  %s3698_s27 = smov %s3048_s28 }
 0x8c1   : > { %s3699_s28 = smov %s3052_s29  ;;  %s3700_s29 = smov %s3261_s22 }
 0x8c2   : > { %s3701_s30 = smov %s3251_s26  ;;  %25 = sbr.rel (!%p23_p4) target bundleno = 7 (0x7), region = 109 }
 0x8c9   :  { %2020 = vsyncpa [#allocation3], 1 }
 0x8ca   :  { %2022 = vsyncpa [#allocation3 + $0x1], 1 }
 0x8cb   :  { %2023 = vsyncpa [#allocation6], 1 }
 0x8cc   :  { %2024 = vsyncpa [#allocation9], 1 }
 0x8cd   :  { %2025 = vsyncpa [#allocation4], 1 }
 0x8ce   :  { %2027 = vsyncpa [#allocation4 + $0x1], 1 }

</bundles_post_ra>
